<compile_context>
chip_gen: v7x
topology: tpu7x:2x2x1
jax: 0.10.0
libtpu: 0.0.40
codegen_flags: <defaults>
</compile_context>

<pallas_src>
import numpy as np
import jax
import jax.numpy as jnp
from jax.experimental import pallas as pl
from jax.experimental.pallas import tpu as pltpu


def _round_up(a, b):
    return (a + b - 1) // b * b


def _vmem_limit_bytes():
    """Scoped-VMEM limit sized from the actual chip, with double-buffer headroom."""
    try:
        cap = int(pltpu.get_tpu_info().vmem_capacity_bytes)
    except Exception:                       # no TPU info available -> conservative
        cap = 64 * 1024 * 1024
    return int(min(cap * 7 // 8, 100 * 1024 * 1024))


def setup_blur_weights(k, up=0, down=0):
    """2-D blur weight, identical to the PyTorch module (used by the reference)."""
    assert not (up and down)
    if k is None:
        k = [1] * (up or down)
    kk = jnp.asarray(k, dtype=jnp.float32)
    if kk.ndim == 1:
        kk = kk[:, None] * kk[None, :]
    kk = kk / jnp.sum(kk)
    if up:
        kk = kk * (up ** 2)
    kk = jnp.flip(kk, axis=(0, 1))
    return kk[None, None, :, :]          # (1, 1, Kb, Kb)


def conv2d_downsample(x, conv_w, conv_b, blur_kernel=(1, 3, 3, 1),
                      mxu_bf16=True, channels_last_out=False):
    """StyleGAN2 Conv2d_Downsample forward.

    x      : (N, C, H, W)   NCHW (PyTorch convention)
    conv_w : (OC, C, K, K)  raw (un-scaled) EqualizedLR weight
    conv_b : (OC,)
    blur_kernel       : static tuple of 1-D separable blur taps (default [1,3,3,1])
    mxu_bf16          : static; use bf16 MXU operands (f32 accumulation) for f32/bf16 x
    channels_last_out : static; return NHWC and skip the final transpose pass
    returns (N, OC, H', W')  (or (N, H', W', OC) if channels_last_out)
    """
    N, C, H, W = x.shape
    OC, IC, K, Kw = conv_w.shape
    assert IC == C and Kw == K

    # ---- static geometry (matches the PyTorch module exactly) ----
    k1d = np.asarray(blur_kernel, dtype=np.float64)
    Kb = k1d.shape[0]
    # flip(outer(k,k))/sum == outer(flip(k)/sum(k), flip(k)/sum(k))  -> 1-D taps
    taps = tuple(float(v) for v in (k1d[::-1] / k1d.sum()))
    # group equal taps (e.g. [1,3,3,1] -> 2 multiplies per pass instead of 4)
    _g = {}
    for t, v in enumerate(taps):
        _g.setdefault(v, []).append(t)
    tap_groups = tuple((v, tuple(ts)) for v, ts in _g.items())

    p = Kb - 2 + (K - 1)
    pad0, pad1 = (p + 1) // 2, p // 2
    assert pad0 >= 0 and pad1 >= 0
    Hp, Wp = H + pad0 + pad1, W + pad0 + pad1
    Ho1, Wo1 = Hp - Kb + 1, Wp - Kb + 1                 # blurred (stride-1 FIR) size
    Ho, Wo = (Ho1 - K) // 2 + 1, (Wo1 - K) // 2 + 1     # conv output, stride 2, VALID
    assert Ho >= 1 and Wo >= 1
    Wo_p = _round_up(Wo, 8)       # sublane-aligned output width (extra cols dropped)

    # polyphase extents: blurred row/col of parity ph at index m  <->  2m + ph
    row_phases = sorted({kh % 2 for kh in range(K)})
    col_phases = sorted({kw % 2 for kw in range(K)})
    nrows = {ph: Ho + max(kh // 2 for kh in range(K) if kh % 2 == ph) for ph in row_phases}
    ncols = {q: Wo_p + max(kw // 2 for kw in range(K) if kw % 2 == q) for q in col_phases}
    HsP = max(-(-Hp // 2),
              max((ph + t) // 2 + nrows[ph] for ph in row_phases for t in range(Kb)))
    WsP = max(-(-Wp // 2),
              max((q + t) // 2 + ncols[q] for q in col_phases for t in range(Kb)))

    # ---- tiling ----
    if C > 128:
        C_TILE, Cp = 128, _round_up(C, 128)
    else:
        C_TILE, Cp = C, C
    C_tiles = Cp // C_TILE
    OCp = _round_up(OC, 128)
    OC_TILE = 256 if OCp % 256 == 0 else 128
    OC_tiles = OCp // OC_TILE
    KKC = K * K * C_TILE

    # MXU operand dtype: bf16-native MXU path (f32 accumulation) unless disabled.
    if mxu_bf16 and (x.dtype == jnp.float32 or x.dtype == jnp.bfloat16):
        mm_dtype = jnp.bfloat16
    else:
        mm_dtype = x.dtype

    # ---- wrapper glue: ONE pad + space-to-depth transpose of the raw input.
    # x_ps[n, pa, pb, I, J, c] == zero-padded input at (row 2I+pa, col 2J+pb, ch c)
    x_pad = jnp.pad(x, ((0, 0), (0, Cp - C),
                        (pad0, 2 * HsP - H - pad0),
                        (pad0, 2 * WsP - W - pad0)))
    x_ps = x_pad.reshape(N, Cp, HsP, 2, WsP, 2).transpose(0, 3, 5, 2, 4, 1)

    # ---- equalized-LR weights in im2col layout (C_tiles, K*K*C_TILE, OCp) ----
    scale = 1.0 / np.sqrt(IC * K * K)
    w = jnp.transpose(conv_w, (2, 3, 1, 0)).astype(jnp.float32) * scale    # (K,K,C,OC)
    w = jnp.pad(w, ((0, 0), (0, 0), (0, Cp - C), (0, OCp - OC)))
    w = (w.reshape(K, K, C_tiles, C_TILE, OCp)
          .transpose(2, 0, 1, 3, 4)
          .reshape(C_tiles, KKC, OCp)
          .astype(mm_dtype))
    b = jnp.pad(conv_b.astype(jnp.float32), (0, OCp - OC)).reshape(1, OCp)

    def kernel(x_ref, w_ref, b_ref, o_ref, slab_ref, *acc_refs):
        c_idx = pl.program_id(1)
        j_idx = pl.program_id(2)

        # (re)build the blurred im2col slab ONCE per (n, c-tile); every OC tile reuses it.
        @pl.when(j_idx == 0)
        def _build_slab():
            # polyphase planes of the padded input (f32 for the VPU blur)
            xp = [[x_ref[pa, pb].astype(jnp.float32) for pb in range(2)]
                  for pa in range(2)]                             # each (HsP, WsP, Ct)

            # separable blur, horizontal pass:
            #   hh[pa][q][I, j, c] = horizontal blur of row 2I+pa evaluated at col 2j+q
            hh = [[None, None], [None, None]]
            for pa in range(2):
                for q in col_phases:
                    acc = None
                    for v, ts in tap_groups:      # equal taps: sum slices, multiply once
                        s = None
                        for t in ts:
                            src = xp[pa][(q + t) % 2]
                            ofs = (q + t) // 2
                            sl = src[:, ofs:ofs + ncols[q], :]
                            s = sl if s is None else s + sl
                        acc = s * v if acc is None else acc + s * v
                    hh[pa][q] = acc                               # (HsP, ncols[q], Ct)

            # separable blur, vertical pass:
            #   blr[ph][q][m, j, c] = blurred[2m+ph, 2j+q, c]
            blr = [[None, None], [None, None]]
            for ph in row_phases:
                for q in col_phases:
                    acc = None
                    for v, ts in tap_groups:
                        s = None
                        for t in ts:
                            src = hh[(ph + t) % 2][q]
                            ofs = (ph + t) // 2
                            sl = src[ofs:ofs + nrows[ph], :, :]
                            s = sl if s is None else s + sl
                        acc = s * v if acc is None else acc + s * v
                    blr[ph][q] = acc                              # (nrows[ph], ncols[q], Ct)

            # im2col slab in MXU dtype (each patch cast BEFORE the concat)
            cols = []
            for kh in range(K):
                for kw in range(K):
                    patch = blr[kh % 2][kw % 2][kh // 2:kh // 2 + Ho,
                                                kw // 2:kw // 2 + Wo_p, :]
                    cols.append(patch.reshape(Ho * Wo_p, C_TILE).astype(mm_dtype))
            slab_ref[...] = jnp.concatenate(cols, axis=1)         # (Ho*Wo_p, KKC)

        # ONE MXU matmul per (n, c-tile, oc-tile), contraction K*K*C_TILE
        contrib = jnp.dot(slab_ref[...], w_ref[...],
                          preferred_element_type=jnp.float32)     # (Ho*Wo_p, OC_TILE)

        if C_tiles == 1:
            out = contrib + b_ref[...]
            o_ref[...] = out.reshape(Ho, Wo_p, OC_TILE).astype(o_ref.dtype)
        else:
            acc_ref = acc_refs[0]                                 # (OC_tiles, Ho*Wo_p, OC_TILE)

            @pl.when(c_idx == 0)
            def _init():
                acc_ref[j_idx] = contrib

            @pl.when(c_idx > 0)
            def _accum():
                acc_ref[j_idx] = acc_ref[j_idx] + contrib

            @pl.when(c_idx == pl.num_programs(1) - 1)
            def _finalize():
                out = acc_ref[j_idx] + b_ref[...]
                o_ref[...] = out.reshape(Ho, Wo_p, OC_TILE).astype(o_ref.dtype)

    scratch_shapes = [pltpu.VMEM((Ho * Wo_p, KKC), mm_dtype)]     # cached im2col slab
    if C_tiles > 1:
        scratch_shapes.append(pltpu.VMEM((OC_tiles, Ho * Wo_p, OC_TILE), jnp.float32))

    out = pl.pallas_call(
        kernel,
        out_shape=jax.ShapeDtypeStruct((N, Ho, Wo_p, OCp), x.dtype),
        grid=(N, C_tiles, OC_tiles),
        in_specs=[
            # x block depends only on (n, c): DMA'd once per (n, c-tile), reused by all OC tiles
            pl.BlockSpec((None, 2, 2, HsP, WsP, C_TILE),
                         lambda n, c, j: (n, 0, 0, 0, 0, c)),
            pl.BlockSpec((None, KKC, OC_TILE), lambda n, c, j: (c, 0, j)),
            pl.BlockSpec((1, OC_TILE), lambda n, c, j: (0, j)),
        ],
        out_specs=pl.BlockSpec((None, Ho, Wo_p, OC_TILE), lambda n, c, j: (n, 0, 0, j)),
        scratch_shapes=scratch_shapes,
        compiler_params=pltpu.CompilerParams(
            # OC axis must stay "arbitrary": the cached slab is only built at oc-tile 0.
            dimension_semantics=("parallel", "arbitrary", "arbitrary"),
            vmem_limit_bytes=_vmem_limit_bytes()),
    )(x_ps, w, b)

    out = out[:, :, :Wo, :OC]                          # drop Wo / OC padding  (N,Ho,Wo,OC)
    if channels_last_out:
        return out                                     # NHWC (skip the transpose pass)
    return jnp.transpose(out, (0, 3, 1, 2))            # NCHW (PyTorch convention)


# ---------------- pure-JAX reference for validation ----------------

def _reference(x, blur_w, conv_w, conv_b):
    N, C, H, W = x.shape
    OC, IC, K, _ = conv_w.shape
    Kb = blur_w.shape[-1]
    p = Kb - 2 + (K - 1)
    pad0, pad1 = (p + 1) // 2, p // 2
    wb = jnp.tile(blur_w, (C, 1, 1, 1))                           # (C, 1, Kb, Kb)
    y = jax.lax.conv_general_dilated(
        x, wb, window_strides=(1, 1),
        padding=[(pad0, pad1), (pad0, pad1)],
        feature_group_count=C,
        dimension_numbers=('NCHW', 'OIHW', 'NCHW'))
    scale = 1.0 / np.sqrt(IC * K * K)
    out = jax.lax.conv_general_dilated(
        y, conv_w * scale, window_strides=(2, 2), padding='VALID',
        dimension_numbers=('NCHW', 'OIHW', 'NCHW'))
    return out + conv_b[None, :, None, None]


if __name__ == "__main__":
    key = jax.random.PRNGKey(0)
    k1, k2, k3 = jax.random.split(key, 3)

    N, IC, H, W = 2, 4, 16, 16
    OC, K = 8, 3
    blur_kernel = (1, 3, 3, 1)

    x = jax.random.normal(k1, (N, IC, H, W), jnp.float32)
    conv_w = jax.random.normal(k2, (OC, IC, K, K), jnp.float32)   # EqualizedLR: N(0,1)
    conv_b = 0.1 * jax.random.normal(k3, (OC,), jnp.float32)

    fwd = jax.jit(conv2d_downsample,
                  static_argnames=("blur_kernel", "mxu_bf16", "channels_last_out"))
    out = fwd(x, conv_w, conv_b, blur_kernel=blur_kernel)
    out = jax.block_until_ready(out)

    blur_w = setup_blur_weights(list(blur_kernel), down=2)        # (1, 1, 4, 4)
    ref = _reference(x, blur_w, conv_w, conv_b)
    assert out.shape == (N, OC, H // 2, W // 2), out.shape
    # Tolerance covers the bf16 MXU-operand path (f32 blur + f32 accumulation,
    # ~2^-9 relative operand rounding over a 36-deep contraction).
    if not np.allclose(np.asarray(out), np.asarray(ref), atol=5e-3, rtol=5e-3):
        err = float(np.max(np.abs(np.asarray(out) - np.asarray(ref))))
        raise AssertionError(f"Pallas result does not match JAX reference (max abs err {err})")

    print("KERNEL_OK")
</pallas_src>

<mosaic_0001>
module attributes {stable_mosaic.version = 11 : i64} {
  func.func @kernel(%arg0: i32, %arg1: i32, %arg2: i32, %arg3: memref<1x2x2x10x10x4xf32, #tpu.memory_space<vmem>>, %arg4: memref<1x36x128xbf16, #tpu.memory_space<vmem>>, %arg5: memref<1x128xf32, #tpu.memory_space<vmem>>, %arg6: memref<1x8x8x128xf32, #tpu.memory_space<vmem>>, %arg7: memref<64x36xbf16, #tpu.memory_space<vmem>>) attributes {dimension_semantics = [#tpu.dimension_semantics<parallel>, #tpu.dimension_semantics<arbitrary>, #tpu.dimension_semantics<arbitrary>], iteration_bounds = array<i64: 2, 1, 1>, scalar_prefetch = 0 : i64, scratch_operands = 1 : i64, tpu.core_type = #tpu.core_type<tc>, window_params = [{transform_indices = @transform_0, window_bounds = array<i64: 1, 2, 2, 10, 10, 4>}, {transform_indices = @transform_1, window_bounds = array<i64: 1, 36, 128>}, {transform_indices = @transform_2, window_bounds = array<i64: 1, 128>}, {transform_indices = @transform_3, window_bounds = array<i64: 1, 8, 8, 128>}]} {
    %c0_i32 = arith.constant 0 : i32
    %0 = arith.cmpi eq, %arg2, %c0_i32 : i32
    %1 = arith.extui %0 : i1 to i32
    %c0_i32_0 = arith.constant 0 : i32
    %2 = arith.cmpi ne, %1, %c0_i32_0 : i32
    scf.if %2 {
      %c0_11 = arith.constant 0 : index
      %c0_12 = arith.constant 0 : index
      %c0_13 = arith.constant 0 : index
      %c0_14 = arith.constant 0 : index
      %c0_15 = arith.constant 0 : index
      %c0_16 = arith.constant 0 : index
      %14 = vector.load %arg3[%c0_11, %c0_12, %c0_13, %c0_14, %c0_15, %c0_16] : memref<1x2x2x10x10x4xf32, #tpu.memory_space<vmem>>, vector<1x1x1x10x10x4xf32>
      %15 = vector.shape_cast %14 : vector<1x1x1x10x10x4xf32> to vector<10x10x4xf32>
      %c0_17 = arith.constant 0 : index
      %c0_18 = arith.constant 0 : index
      %c1 = arith.constant 1 : index
      %c0_19 = arith.constant 0 : index
      %c0_20 = arith.constant 0 : index
      %c0_21 = arith.constant 0 : index
      %16 = vector.load %arg3[%c0_17, %c0_18, %c1, %c0_19, %c0_20, %c0_21] : memref<1x2x2x10x10x4xf32, #tpu.memory_space<vmem>>, vector<1x1x1x10x10x4xf32>
      %17 = vector.shape_cast %16 : vector<1x1x1x10x10x4xf32> to vector<10x10x4xf32>
      %c0_22 = arith.constant 0 : index
      %c1_23 = arith.constant 1 : index
      %c0_24 = arith.constant 0 : index
      %c0_25 = arith.constant 0 : index
      %c0_26 = arith.constant 0 : index
      %c0_27 = arith.constant 0 : index
      %18 = vector.load %arg3[%c0_22, %c1_23, %c0_24, %c0_25, %c0_26, %c0_27] : memref<1x2x2x10x10x4xf32, #tpu.memory_space<vmem>>, vector<1x1x1x10x10x4xf32>
      %19 = vector.shape_cast %18 : vector<1x1x1x10x10x4xf32> to vector<10x10x4xf32>
      %c0_28 = arith.constant 0 : index
      %c1_29 = arith.constant 1 : index
      %c1_30 = arith.constant 1 : index
      %c0_31 = arith.constant 0 : index
      %c0_32 = arith.constant 0 : index
      %c0_33 = arith.constant 0 : index
      %20 = vector.load %arg3[%c0_28, %c1_29, %c1_30, %c0_31, %c0_32, %c0_33] : memref<1x2x2x10x10x4xf32, #tpu.memory_space<vmem>>, vector<1x1x1x10x10x4xf32>
      %21 = vector.shape_cast %20 : vector<1x1x1x10x10x4xf32> to vector<10x10x4xf32>
      %22 = vector.extract_strided_slice %15 {offsets = [0, 0, 0], sizes = [10, 9, 4], strides = [1, 1, 1]} : vector<10x10x4xf32> to vector<10x9x4xf32>
      %23 = vector.extract_strided_slice %17 {offsets = [0, 1, 0], sizes = [10, 9, 4], strides = [1, 1, 1]} : vector<10x10x4xf32> to vector<10x9x4xf32>
      %24 = arith.addf %22, %23 : vector<10x9x4xf32>
      %cst_34 = arith.constant 1.250000e-01 : f32
      %25 = vector.broadcast %cst_34 : f32 to vector<10x9x4xf32>
      %26 = arith.mulf %24, %25 : vector<10x9x4xf32>
      %27 = vector.extract_strided_slice %17 {offsets = [0, 0, 0], sizes = [10, 9, 4], strides = [1, 1, 1]} : vector<10x10x4xf32> to vector<10x9x4xf32>
      %28 = vector.extract_strided_slice %15 {offsets = [0, 1, 0], sizes = [10, 9, 4], strides = [1, 1, 1]} : vector<10x10x4xf32> to vector<10x9x4xf32>
      %29 = arith.addf %27, %28 : vector<10x9x4xf32>
      %cst_35 = arith.constant 3.750000e-01 : f32
      %30 = vector.broadcast %cst_35 : f32 to vector<10x9x4xf32>
      %31 = arith.mulf %29, %30 : vector<10x9x4xf32>
      %32 = arith.addf %26, %31 : vector<10x9x4xf32>
      %33 = vector.extract_strided_slice %17 {offsets = [0, 0, 0], sizes = [10, 8, 4], strides = [1, 1, 1]} : vector<10x10x4xf32> to vector<10x8x4xf32>
      %34 = vector.extract_strided_slice %15 {offsets = [0, 2, 0], sizes = [10, 8, 4], strides = [1, 1, 1]} : vector<10x10x4xf32> to vector<10x8x4xf32>
      %35 = arith.addf %33, %34 : vector<10x8x4xf32>
      %cst_36 = arith.constant 1.250000e-01 : f32
      %36 = vector.broadcast %cst_36 : f32 to vector<10x8x4xf32>
      %37 = arith.mulf %35, %36 : vector<10x8x4xf32>
      %38 = vector.extract_strided_slice %15 {offsets = [0, 1, 0], sizes = [10, 8, 4], strides = [1, 1, 1]} : vector<10x10x4xf32> to vector<10x8x4xf32>
      %39 = vector.extract_strided_slice %17 {offsets = [0, 1, 0], sizes = [10, 8, 4], strides = [1, 1, 1]} : vector<10x10x4xf32> to vector<10x8x4xf32>
      %40 = arith.addf %38, %39 : vector<10x8x4xf32>
      %cst_37 = arith.constant 3.750000e-01 : f32
      %41 = vector.broadcast %cst_37 : f32 to vector<10x8x4xf32>
      %42 = arith.mulf %40, %41 : vector<10x8x4xf32>
      %43 = arith.addf %37, %42 : vector<10x8x4xf32>
      %44 = vector.extract_strided_slice %19 {offsets = [0, 0, 0], sizes = [10, 9, 4], strides = [1, 1, 1]} : vector<10x10x4xf32> to vector<10x9x4xf32>
      %45 = vector.extract_strided_slice %21 {offsets = [0, 1, 0], sizes = [10, 9, 4], strides = [1, 1, 1]} : vector<10x10x4xf32> to vector<10x9x4xf32>
      %46 = arith.addf %44, %45 : vector<10x9x4xf32>
      %cst_38 = arith.constant 1.250000e-01 : f32
      %47 = vector.broadcast %cst_38 : f32 to vector<10x9x4xf32>
      %48 = arith.mulf %46, %47 : vector<10x9x4xf32>
      %49 = vector.extract_strided_slice %21 {offsets = [0, 0, 0], sizes = [10, 9, 4], strides = [1, 1, 1]} : vector<10x10x4xf32> to vector<10x9x4xf32>
      %50 = vector.extract_strided_slice %19 {offsets = [0, 1, 0], sizes = [10, 9, 4], strides = [1, 1, 1]} : vector<10x10x4xf32> to vector<10x9x4xf32>
      %51 = arith.addf %49, %50 : vector<10x9x4xf32>
      %cst_39 = arith.constant 3.750000e-01 : f32
      %52 = vector.broadcast %cst_39 : f32 to vector<10x9x4xf32>
      %53 = arith.mulf %51, %52 : vector<10x9x4xf32>
      %54 = arith.addf %48, %53 : vector<10x9x4xf32>
      %55 = vector.extract_strided_slice %21 {offsets = [0, 0, 0], sizes = [10, 8, 4], strides = [1, 1, 1]} : vector<10x10x4xf32> to vector<10x8x4xf32>
      %56 = vector.extract_strided_slice %19 {offsets = [0, 2, 0], sizes = [10, 8, 4], strides = [1, 1, 1]} : vector<10x10x4xf32> to vector<10x8x4xf32>
      %57 = arith.addf %55, %56 : vector<10x8x4xf32>
      %cst_40 = arith.constant 1.250000e-01 : f32
      %58 = vector.broadcast %cst_40 : f32 to vector<10x8x4xf32>
      %59 = arith.mulf %57, %58 : vector<10x8x4xf32>
      %60 = vector.extract_strided_slice %19 {offsets = [0, 1, 0], sizes = [10, 8, 4], strides = [1, 1, 1]} : vector<10x10x4xf32> to vector<10x8x4xf32>
      %61 = vector.extract_strided_slice %21 {offsets = [0, 1, 0], sizes = [10, 8, 4], strides = [1, 1, 1]} : vector<10x10x4xf32> to vector<10x8x4xf32>
      %62 = arith.addf %60, %61 : vector<10x8x4xf32>
      %cst_41 = arith.constant 3.750000e-01 : f32
      %63 = vector.broadcast %cst_41 : f32 to vector<10x8x4xf32>
      %64 = arith.mulf %62, %63 : vector<10x8x4xf32>
      %65 = arith.addf %59, %64 : vector<10x8x4xf32>
      %66 = vector.extract_strided_slice %32 {offsets = [0, 0, 0], sizes = [9, 9, 4], strides = [1, 1, 1]} : vector<10x9x4xf32> to vector<9x9x4xf32>
      %67 = vector.extract_strided_slice %54 {offsets = [1, 0, 0], sizes = [9, 9, 4], strides = [1, 1, 1]} : vector<10x9x4xf32> to vector<9x9x4xf32>
      %68 = arith.addf %66, %67 : vector<9x9x4xf32>
      %cst_42 = arith.constant 1.250000e-01 : f32
      %69 = vector.broadcast %cst_42 : f32 to vector<9x9x4xf32>
      %70 = arith.mulf %68, %69 : vector<9x9x4xf32>
      %71 = vector.extract_strided_slice %54 {offsets = [0, 0, 0], sizes = [9, 9, 4], strides = [1, 1, 1]} : vector<10x9x4xf32> to vector<9x9x4xf32>
      %72 = vector.extract_strided_slice %32 {offsets = [1, 0, 0], sizes = [9, 9, 4], strides = [1, 1, 1]} : vector<10x9x4xf32> to vector<9x9x4xf32>
      %73 = arith.addf %71, %72 : vector<9x9x4xf32>
      %cst_43 = arith.constant 3.750000e-01 : f32
      %74 = vector.broadcast %cst_43 : f32 to vector<9x9x4xf32>
      %75 = arith.mulf %73, %74 : vector<9x9x4xf32>
      %76 = arith.addf %70, %75 : vector<9x9x4xf32>
      %77 = vector.extract_strided_slice %43 {offsets = [0, 0, 0], sizes = [9, 8, 4], strides = [1, 1, 1]} : vector<10x8x4xf32> to vector<9x8x4xf32>
      %78 = vector.extract_strided_slice %65 {offsets = [1, 0, 0], sizes = [9, 8, 4], strides = [1, 1, 1]} : vector<10x8x4xf32> to vector<9x8x4xf32>
      %79 = arith.addf %77, %78 : vector<9x8x4xf32>
      %cst_44 = arith.constant 1.250000e-01 : f32
      %80 = vector.broadcast %cst_44 : f32 to vector<9x8x4xf32>
      %81 = arith.mulf %79, %80 : vector<9x8x4xf32>
      %82 = vector.extract_strided_slice %65 {offsets = [0, 0, 0], sizes = [9, 8, 4], strides = [1, 1, 1]} : vector<10x8x4xf32> to vector<9x8x4xf32>
      %83 = vector.extract_strided_slice %43 {offsets = [1, 0, 0], sizes = [9, 8, 4], strides = [1, 1, 1]} : vector<10x8x4xf32> to vector<9x8x4xf32>
      %84 = arith.addf %82, %83 : vector<9x8x4xf32>
      %cst_45 = arith.constant 3.750000e-01 : f32
      %85 = vector.broadcast %cst_45 : f32 to vector<9x8x4xf32>
      %86 = arith.mulf %84, %85 : vector<9x8x4xf32>
      %87 = arith.addf %81, %86 : vector<9x8x4xf32>
      %88 = vector.extract_strided_slice %54 {offsets = [0, 0, 0], sizes = [8, 9, 4], strides = [1, 1, 1]} : vector<10x9x4xf32> to vector<8x9x4xf32>
      %89 = vector.extract_strided_slice %32 {offsets = [2, 0, 0], sizes = [8, 9, 4], strides = [1, 1, 1]} : vector<10x9x4xf32> to vector<8x9x4xf32>
      %90 = arith.addf %88, %89 : vector<8x9x4xf32>
      %cst_46 = arith.constant 1.250000e-01 : f32
      %91 = vector.broadcast %cst_46 : f32 to vector<8x9x4xf32>
      %92 = arith.mulf %90, %91 : vector<8x9x4xf32>
      %93 = vector.extract_strided_slice %32 {offsets = [1, 0, 0], sizes = [8, 9, 4], strides = [1, 1, 1]} : vector<10x9x4xf32> to vector<8x9x4xf32>
      %94 = vector.extract_strided_slice %54 {offsets = [1, 0, 0], sizes = [8, 9, 4], strides = [1, 1, 1]} : vector<10x9x4xf32> to vector<8x9x4xf32>
      %95 = arith.addf %93, %94 : vector<8x9x4xf32>
      %cst_47 = arith.constant 3.750000e-01 : f32
      %96 = vector.broadcast %cst_47 : f32 to vector<8x9x4xf32>
      %97 = arith.mulf %95, %96 : vector<8x9x4xf32>
      %98 = arith.addf %92, %97 : vector<8x9x4xf32>
      %99 = vector.extract_strided_slice %65 {offsets = [0, 0, 0], sizes = [8, 8, 4], strides = [1, 1, 1]} : vector<10x8x4xf32> to vector<8x8x4xf32>
      %100 = vector.extract_strided_slice %43 {offsets = [2, 0, 0], sizes = [8, 8, 4], strides = [1, 1, 1]} : vector<10x8x4xf32> to vector<8x8x4xf32>
      %101 = arith.addf %99, %100 : vector<8x8x4xf32>
      %cst_48 = arith.constant 1.250000e-01 : f32
      %102 = vector.broadcast %cst_48 : f32 to vector<8x8x4xf32>
      %103 = arith.mulf %101, %102 : vector<8x8x4xf32>
      %104 = vector.extract_strided_slice %43 {offsets = [1, 0, 0], sizes = [8, 8, 4], strides = [1, 1, 1]} : vector<10x8x4xf32> to vector<8x8x4xf32>
      %105 = vector.extract_strided_slice %65 {offsets = [1, 0, 0], sizes = [8, 8, 4], strides = [1, 1, 1]} : vector<10x8x4xf32> to vector<8x8x4xf32>
      %106 = arith.addf %104, %105 : vector<8x8x4xf32>
      %cst_49 = arith.constant 3.750000e-01 : f32
      %107 = vector.broadcast %cst_49 : f32 to vector<8x8x4xf32>
      %108 = arith.mulf %106, %107 : vector<8x8x4xf32>
      %109 = arith.addf %103, %108 : vector<8x8x4xf32>
      %110 = vector.extract_strided_slice %76 {offsets = [0, 0, 0], sizes = [8, 8, 4], strides = [1, 1, 1]} : vector<9x9x4xf32> to vector<8x8x4xf32>
      %111 = vector.shape_cast %110 : vector<8x8x4xf32> to vector<64x4xf32>
      %112 = arith.truncf %111 : vector<64x4xf32> to vector<64x4xbf16>
      %113 = vector.extract_strided_slice %87 {offsets = [0, 0, 0], sizes = [8, 8, 4], strides = [1, 1, 1]} : vector<9x8x4xf32> to vector<8x8x4xf32>
      %114 = vector.shape_cast %113 : vector<8x8x4xf32> to vector<64x4xf32>
      %115 = arith.truncf %114 : vector<64x4xf32> to vector<64x4xbf16>
      %116 = vector.extract_strided_slice %76 {offsets = [0, 1, 0], sizes = [8, 8, 4], strides = [1, 1, 1]} : vector<9x9x4xf32> to vector<8x8x4xf32>
      %117 = vector.shape_cast %116 : vector<8x8x4xf32> to vector<64x4xf32>
      %118 = arith.truncf %117 : vector<64x4xf32> to vector<64x4xbf16>
      %119 = vector.extract_strided_slice %98 {offsets = [0, 0, 0], sizes = [8, 8, 4], strides = [1, 1, 1]} : vector<8x9x4xf32> to vector<8x8x4xf32>
      %120 = vector.shape_cast %119 : vector<8x8x4xf32> to vector<64x4xf32>
      %121 = arith.truncf %120 : vector<64x4xf32> to vector<64x4xbf16>
      %122 = vector.shape_cast %109 : vector<8x8x4xf32> to vector<64x4xf32>
      %123 = arith.truncf %122 : vector<64x4xf32> to vector<64x4xbf16>
      %124 = vector.extract_strided_slice %98 {offsets = [0, 1, 0], sizes = [8, 8, 4], strides = [1, 1, 1]} : vector<8x9x4xf32> to vector<8x8x4xf32>
      %125 = vector.shape_cast %124 : vector<8x8x4xf32> to vector<64x4xf32>
      %126 = arith.truncf %125 : vector<64x4xf32> to vector<64x4xbf16>
      %127 = vector.extract_strided_slice %76 {offsets = [1, 0, 0], sizes = [8, 8, 4], strides = [1, 1, 1]} : vector<9x9x4xf32> to vector<8x8x4xf32>
      %128 = vector.shape_cast %127 : vector<8x8x4xf32> to vector<64x4xf32>
      %129 = arith.truncf %128 : vector<64x4xf32> to vector<64x4xbf16>
      %130 = vector.extract_strided_slice %87 {offsets = [1, 0, 0], sizes = [8, 8, 4], strides = [1, 1, 1]} : vector<9x8x4xf32> to vector<8x8x4xf32>
      %131 = vector.shape_cast %130 : vector<8x8x4xf32> to vector<64x4xf32>
      %132 = arith.truncf %131 : vector<64x4xf32> to vector<64x4xbf16>
      %133 = vector.extract_strided_slice %76 {offsets = [1, 1, 0], sizes = [8, 8, 4], strides = [1, 1, 1]} : vector<9x9x4xf32> to vector<8x8x4xf32>
      %134 = vector.shape_cast %133 : vector<8x8x4xf32> to vector<64x4xf32>
      %135 = arith.truncf %134 : vector<64x4xf32> to vector<64x4xbf16>
      %136 = tpu.concatenate %112, %115, %118, %121, %123, %126, %129, %132, %135 in 1 : vector<64x4xbf16>, vector<64x4xbf16>, vector<64x4xbf16>, vector<64x4xbf16>, vector<64x4xbf16>, vector<64x4xbf16>, vector<64x4xbf16>, vector<64x4xbf16>, vector<64x4xbf16> -> vector<64x36xbf16>
      %c0_50 = arith.constant 0 : index
      %c0_51 = arith.constant 0 : index
      %137 = vector.load %arg7[%c0_50, %c0_51] : memref<64x36xbf16, #tpu.memory_space<vmem>>, vector<64x36xbf16>
      tpu.vector_store %arg7[%c0_50, %c0_51], %136 {strides = array<i32>} : memref<64x36xbf16, #tpu.memory_space<vmem>>, vector<64x36xbf16>,
    } else {
    }
    %c0 = arith.constant 0 : index
    %c0_1 = arith.constant 0 : index
    %3 = vector.load %arg7[%c0, %c0_1] : memref<64x36xbf16, #tpu.memory_space<vmem>>, vector<64x36xbf16>
    %c0_2 = arith.constant 0 : index
    %c0_3 = arith.constant 0 : index
    %c0_4 = arith.constant 0 : index
    %4 = vector.load %arg4[%c0_2, %c0_3, %c0_4] : memref<1x36x128xbf16, #tpu.memory_space<vmem>>, vector<1x36x128xbf16>
    %5 = vector.shape_cast %4 : vector<1x36x128xbf16> to vector<36x128xbf16>
    %cst = arith.constant dense<0.000000e+00> : vector<64x128xf32>
    %6 = tpu.matmul %3, %5, %cst {dimension_numbers = #tpu.dot_dimension_numbers<[1], [0], [0], [1], [0, 0, 1, 1], [], []>} : vector<64x36xbf16>, vector<36x128xbf16>, vector<64x128xf32> -> vector<64x128xf32>
    %c0_5 = arith.constant 0 : index
    %c0_6 = arith.constant 0 : index
    %7 = vector.load %arg5[%c0_5, %c0_6] : memref<1x128xf32, #tpu.memory_space<vmem>>, vector<1x128xf32>
    %8 = vector.broadcast %7 : vector<1x128xf32> to vector<64x128xf32>
    %9 = arith.addf %6, %8 : vector<64x128xf32>
    %10 = vector.shape_cast %9 : vector<64x128xf32> to vector<8x8x128xf32>
    %c0_7 = arith.constant 0 : index
    %c0_8 = arith.constant 0 : index
    %c0_9 = arith.constant 0 : index
    %c0_10 = arith.constant 0 : index
    %11 = vector.load %arg6[%c0_7, %c0_8, %c0_9, %c0_10] : memref<1x8x8x128xf32, #tpu.memory_space<vmem>>, vector<1x8x8x128xf32>
    %12 = vector.shape_cast %11 : vector<1x8x8x128xf32> to vector<8x8x128xf32>
    %13 = vector.shape_cast %10 : vector<8x8x128xf32> to vector<1x8x8x128xf32>
    tpu.vector_store %arg6[%c0_7, %c0_8, %c0_9, %c0_10], %13 {strides = array<i32>} : memref<1x8x8x128xf32, #tpu.memory_space<vmem>>, vector<1x8x8x128xf32>,
    return
  }
  func.func @transform_0(%arg0: i32, %arg1: i32, %arg2: i32) -> (i32, i32, i32, i32, i32, i32) {
    %c0_i32 = arith.constant 0 : i32
    %c0_i32_0 = arith.constant 0 : i32
    %c0_i32_1 = arith.constant 0 : i32
    %c0_i32_2 = arith.constant 0 : i32
    %c0_i32_3 = arith.constant 0 : i32
    return %arg0, %c0_i32, %c0_i32_0, %c0_i32_1, %c0_i32_2, %arg1 : i32, i32, i32, i32, i32, i32
  }
  func.func @transform_1(%arg0: i32, %arg1: i32, %arg2: i32) -> (i32, i32, i32) {
    %c0_i32 = arith.constant 0 : i32
    %c0_i32_0 = arith.constant 0 : i32
    return %arg1, %c0_i32, %arg2 : i32, i32, i32
  }
  func.func @transform_2(%arg0: i32, %arg1: i32, %arg2: i32) -> (i32, i32) {
    %c0_i32 = arith.constant 0 : i32
    %c0_i32_0 = arith.constant 0 : i32
    return %c0_i32, %arg2 : i32, i32
  }
  func.func @transform_3(%arg0: i32, %arg1: i32, %arg2: i32) -> (i32, i32, i32, i32) {
    %c0_i32 = arith.constant 0 : i32
    %c0_i32_0 = arith.constant 0 : i32
    %c0_i32_1 = arith.constant 0 : i32
    return %arg0, %c0_i32, %c0_i32_0, %arg2 : i32, i32, i32, i32
  }
}

</mosaic_0001>

<bundles_post_ra>
// kernel: conv2d_downsample.1
= control target key start
LH: loop header
LB: loop body
LE: loop exit
PB: predicated region body
PF: predicated region fallthrough
CT: control target
= control target key end

     0   :  { %s2211_s12 = smov 0   ;;  %s2213_s13 = smov 0   ;;  %s3504_s0 = inlined_call_operand.vmem [shape: f32[2,2,2,10,10,4], index: 0, kind: input, shape index: {}]   ;;  %s3505_s1 = inlined_call_operand.vmem [shape: bf16[1,36,128], index: 1, kind: input, shape index: {}]   ;;  %s3506_s2 = inlined_call_operand.vmem [shape: f32[1,128], index: 2, kind: input, shape index: {}]   ;;  %s3507_s3 = inlined_call_operand.vmem [shape: f32[2,8,8,128], index: 3, kind: output, shape index: {}]  }
   0x1   :  { %s2215_s14 = smov 0  }
   0x2 LB: > { %s32_s15 = sadd.s32 1, %s2177_s13  ;;  %p1985_p0 = scmp.ge.s32.totalorder %s2181_s14, 1  ;;  %s2181_s14 = sphi %s2215_s14, %s13_s14   ;;  %s2177_s13 = sphi %s2213_s13, %s3843_s13   ;;  %s2173_s12 = sphi %s2211_s12, %s3842_s12  }
   0x3   : > { %p34_p1 = scmp.ge.s32.totalorder %s32_s15, 2  ;;  %p186_p2 = scmp.lt.s32.totalorder %s2181_s14, 3 }
   0x5   : > { %s3845_s15 = smov (%p34_p1, %s32_s15), 0  ;;  %p187_p3 = pnand %p1985_p0, %p186_p2 }
   0x7   : > { %190 = sbr.rel (%p187_p3) target bundleno = 619 (0x26b), region = 32 }
   0xe   : > { %p227_p4 = scmp.lt.s32.totalorder %s2173_s12, 1  ;;  %vm583_vm0 = vcmask 1045504   ;;  %vm362_vm1 = vcmask 1046528   ;;  %s2183_s20 = smov 4   ;;  %vm1782_vm2 = vcmask 1041408   ;;  %vm1653_vm3 = vcmask 31744  }
   0xf   : > { %s2184_s21 = smov 12   ;;  %s2185_s22 = smov 16   ;;  %vm1666_vm4 = vcmask 64512   ;;  %vm1675_vm5 = vcmask 97280   ;;  %vm1684_vm6 = vcmask 130048   ;;  %vm1693_vm7 = vcmask 162816  }
  0x10   : > { %s3847_s12 = smov (!%p227_p4, %s2173_s12), 1  ;;  %s2186_s23 = smov 8   ;;  %vm1702_vm8 = vcmask 195584   ;;  %vm1711_vm9 = vcmask 228352   ;;  %vm1720_vm10 = vcmask 261120   ;;  %vm1733_vm11 = vcmask 293888  }
  0x11   : > { %s2089_s16 = smul.u32 640, %s3847_s12  ;;  %s2187_s24 = smov 20  }
  0x12   : > { %s2188_s25 = smov 24   ;;  %s2189_s30 = smov 28  }
  0x13   : > { %s2235_s19 = scalar_lea.vmem %s3504_s0, %s2089_s16  ;;  %s2190_s6 = smov 32  }
  0x14   : > { %v2238_v0 = vld [vmem:[%s2235_s19 + $0x20] sm:$0xff]  ;;  %v2241_v1 = vld [vmem:[%s2235_s19 + $0x28] sm:$0x3]  ;;  %v2244_v2 = vld [vmem:[%s2235_s19 + $0x30] sm:$0xff]  ;;  %s2059_s7 = sshll.u32 %s3847_s12, 6 }
  0x15   : > { %3660 = vst [vmem:[#allocation3_spill] sm:$0xff] %v2241_v1  ;;  %v2247_v3 = vld [vmem:[%s2235_s19 + $0x38] sm:$0x3]  ;;  %v267_v4 = vld [vmem:[%s2235_s19 + $0x40] sm:$0xff]  ;;  %v268_v5 = vld [vmem:[%s2235_s19 + $0x48] sm:$0x3]  ;;  %s253_s16 = scalar_lea.vmem %s3507_s3, %s2059_s7 }
  0x16   : > { %3661 = vst [vmem:[#allocation4_spill] sm:$0xff] %v2247_v3  ;;  %v590_v6 = vrot.slane %v2238_v0, 2  ;;  %v2253_v7 = vld [vmem:[%s2235_s19 + $0xc0] sm:$0xff]  ;;  %v2256_v8 = vld [vmem:[%s2235_s19 + $0xc8] sm:$0x3]  ;;  %v2259_v9 = vld [vmem:[%s2235_s19 + $0xd0] sm:$0xff] }
  0x17   : > { %3662 = vst [vmem:[#allocation5_spill] sm:$0xff] %v2256_v8  ;;  %v591_v10 = vrot.slane %v2241_v1, 2  ;;  %v593_v11 = vrot.slane %v2244_v2, 2  ;;  %v2264_v12 = vld [vmem:[%s2235_s19 + $0xd8] sm:$0x3]  ;;  %v1997_v13 = vld [vmem:[%s2235_s19 + $0xe0] sm:$0xff]  ;;  %v648_v16 = vadd.f32 %v2253_v7, %v2238_v0  ;;  %v649_v17 = vadd.f32 %v2256_v8, %v2241_v1 }
  0x18   : > { %3663 = vst [vmem:[#allocation6_spill] sm:$0xff] %v2264_v12  ;;  %v1998_v14 = vld [vmem:[%s2235_s19 + $0xe8] sm:$0x3]  ;;  %v594_v15 = vrot.slane %v2247_v3, 2  ;;  %v650_v18 = vadd.f32 %v2259_v9, %v2244_v2  ;;  %v2276_v19 = vld [vmem:[%s2235_s19 + $0x160] sm:$0xff]  ;;  %v596_v21 = vrot.slane %v267_v4, 2  ;;  %v651_v23 = vadd.f32 %v2264_v12, %v2247_v3 }
  0x19   : > { %3664 = vst [vmem:[#allocation7_spill] sm:$0xff] %v2276_v19  ;;  %v592_v20 = vsel %vm583_vm0, %v590_v6, %v591_v10  ;;  %v597_v22 = vrot.slane %v268_v5, 2  ;;  %v2282_v24 = vld [vmem:[%s2235_s19 + $0x168] sm:$0x3]  ;;  %v652_v27 = vadd.f32 %v1997_v13, %v267_v4  ;;  %v653_v28 = vadd.f32 %v1998_v14, %v268_v5  ;;  %v2287_v29 = vld [vmem:[%s2235_s19 + $0x200] sm:$0xff]  ;;  %v2015_v38 = vld [vmem:[%s2235_s19 + $0x170] sm:$0xff] }
  0x1a   : > { %3665 = vst [vmem:[#allocation8_spill] sm:$0xff] %v2282_v24  ;;  %v595_v25 = vsel %vm583_vm0, %v593_v11, %v594_v15  ;;  %v626_v26 = vadd.f32 %v2253_v7, %v592_v20  ;;  %3666 = vst [vmem:[#allocation9_spill] sm:$0xff] %v2287_v29  ;;  %v2290_v30 = vld [vmem:[%s2235_s19 + $0x208] sm:$0x3]  ;;  %v668_v33 = vmul.f32 0.375, %v648_v16  ;;  %v669_v34 = vmul.f32 0.375, %v649_v17 }
  0x1b   : > { %3667 = vst [vmem:[#allocation10_spill] sm:$0xff] %v2290_v30  ;;  %v598_v31 = vsel %vm583_vm0, %v596_v21, %v597_v22  ;;  %v627_v32 = vadd.f32 %v2259_v9, %v595_v25  ;;  %v1058_v37 = vadd.f32 %v2287_v29, %v2276_v19  ;;  %v2016_v39 = vld [vmem:[%s2235_s19 + $0x178] sm:$0x3]  ;;  %v670_v40 = vmul.f32 0.375, %v650_v18  ;;  %v2301_v44 = vld [vmem:[%s2235_s19 + $0x180] sm:$0xff]  ;;  %v2035_v54 = vld [vmem:[%s2235_s19 + $0x210] sm:$0xff] }
  0x1c   : > { %v628_v35 = vadd.f32 %v1997_v13, %v598_v31  ;;  %v636_v36 = vmul.f32 0.125, %v626_v26  ;;  %v671_v41 = vmul.f32 0.375, %v651_v23  ;;  %v672_v42 = vmul.f32 0.375, %v652_v27  ;;  %v2304_v49 = vld [vmem:[%s2235_s19 + $0x188] sm:$0x3]  ;;  %v2314_v60 = vld [vmem:[%s2235_s19 + $0x220] sm:$0xff] }
  0x1d   : > { %v1059_v43 = vadd.f32 %v2290_v30, %v2282_v24  ;;  %v637_v45 = vmul.f32 0.125, %v627_v32  ;;  %v673_v46 = vmul.f32 0.375, %v653_v28  ;;  %v710_v47 = vrot.slane %v668_v33, 1  ;;  %v2311_v59 = vld [vmem:[%s2235_s19 + $0x218] sm:$0x3]  ;;  %v2340_v28 = vld [vmem:[%s2235_s19] sm:$0xff] }
  0x1e   : > { %v711_v48 = vrot.slane %v669_v34, 1  ;;  %v713_v50 = vrot.slane %v670_v40, 1  ;;  %v714_v51 = vrot.slane %v671_v41, 1  ;;  %v716_v52 = vrot.slane %v672_v42, 1  ;;  %3668 = vst [vmem:[#allocation11_spill] sm:$0xff] %v2311_v59  ;;  %3671 = vst [vmem:[#allocation14_spill] sm:$0xff] %v2340_v28 }
  0x1f   : > { %v1000_v53 = vrot.slane %v2276_v19, 2  ;;  %v717_v56 = vrot.slane %v673_v46, 1  ;;  %v1001_v57 = vrot.slane %v2282_v24, 2  ;;  %v1003_v58 = vrot.slane %v2015_v38, 2  ;;  %v2319_v5 = vld [vmem:[%s2235_s19 + $0x228] sm:$0x3] }
  0x20   : > { %v712_v55 = vsel %vm362_vm1, %v710_v47, %v711_v48  ;;  %v638_v61 = vmul.f32 0.125, %v628_v35  ;;  %v715_v62 = vsel %vm362_vm1, %v713_v50, %v714_v51  ;;  %v1004_v63 = vrot.slane %v2016_v39, 2  ;;  %v2343_v31 = vld [vmem:[%s2235_s19 + $0x10] sm:$0xff]  ;;  %v2347_v42 = vld [vmem:[%s2235_s19 + $0x18] sm:$0x3]  ;;  %v2350_v51 = vld [vmem:[%s2235_s19 + $0xa0] sm:$0xff] }
  0x21   : > { %v1006_v4 = vrot.slane %v2301_v44, 2  ;;  %v718_v6 = vsel %vm362_vm1, %v716_v52, %v717_v56  ;;  %v2322_v10 = vadd.f32 %v712_v55, %v636_v36  ;;  %v1002_v11 = vsel %vm583_vm0, %v1000_v53, %v1001_v57  ;;  %v260_v36 = vld [vmem:[%s2235_s19 + $0x8] sm:$0x3]  ;;  %3672 = vst [vmem:[#allocation15_spill] sm:$0xff] %v2347_v42  ;;  %3673 = vst [vmem:[#allocation16_spill] sm:$0xff] %v2350_v51  ;;  %v2599_v30 = vld [vmem:[%s2235_s19 + $0x190] sm:$0xff] }
  0x22   : > { %v1007_v13 = vrot.slane %v2304_v49, 2  ;;  %v2326_v14 = vadd.f32 %v715_v62, %v637_v45  ;;  %v1005_v15 = vsel %vm583_vm0, %v1003_v58, %v1004_v63  ;;  %v1036_v16 = vadd.f32 %v2287_v29, %v1002_v11  ;;  %v1990_v62 = vld [vmem:[%s2235_s19 + $0xa8] sm:$0x3]  ;;  %v2364_v63 = vld [vmem:[%s2235_s19 + $0xb0] sm:$0xff] }
  0x23   : > { %3669 = vst [vmem:[#allocation12_spill] sm:$0xff] %v2322_v10  ;;  %v1060_v17 = vadd.f32 %v2035_v54, %v2015_v38  ;;  %v1037_v20 = vadd.f32 %v2035_v54, %v1005_v15  ;;  %v1061_v21 = vadd.f32 %v2311_v59, %v2016_v39  ;;  %v1062_v22 = vadd.f32 %v2314_v60, %v2301_v44 }
  0x24   : > { %3670 = vst [vmem:[#allocation13_spill] sm:$0xff] %v2326_v14  ;;  %v1008_v18 = vsel %vm583_vm0, %v1006_v4, %v1007_v13  ;;  %v2334_v23 = vadd.f32 %v718_v6, %v638_v61  ;;  %v1063_v26 = vadd.f32 %v2319_v5, %v2304_v49  ;;  %v1078_v27 = vmul.f32 0.375, %v1058_v37 }
  0x25   : > { %v1038_v25 = vadd.f32 %v2314_v60, %v1008_v18  ;;  %v1046_v32 = vmul.f32 0.125, %v1036_v16  ;;  %v1079_v33 = vmul.f32 0.375, %v1059_v43  ;;  %v1080_v34 = vmul.f32 0.375, %v1060_v17 }
  0x26   : > { %v1081_v35 = vmul.f32 0.375, %v1061_v21  ;;  %v1047_v38 = vmul.f32 0.125, %v1037_v20  ;;  %v1082_v39 = vmul.f32 0.375, %v1062_v22  ;;  %v1083_v40 = vmul.f32 0.375, %v1063_v26  ;;  %v2380_v20 = vld [vmem:[%s2235_s19 + $0xb8] sm:$0x3] }
  0x27   : > { %v1120_v41 = vrot.slane %v1078_v27, 1  ;;  %v1048_v45 = vmul.f32 0.125, %v1038_v25  ;;  %v1121_v46 = vrot.slane %v1079_v33, 1  ;;  %v1123_v37 = vrot.slane %v1080_v34, 1  ;;  %v2386_v25 = vld [vmem:[%s2235_s19 + $0x140] sm:$0xff] }
  0x28   : > { %v1124_v47 = vrot.slane %v1081_v35, 1  ;;  %v1126_v48 = vrot.slane %v1082_v39, 1  ;;  %v1127_v50 = vrot.slane %v1083_v40, 1  ;;  %v584_v43 = vrot.slane %v2340_v28, 2  ;;  %3676 = vst [vmem:[#allocation19_spill] sm:$0xff] %v2386_v25 }
  0x29   : > { %v585_v52 = vrot.slane %v260_v36, 2  ;;  %v1122_v53 = vsel %vm362_vm1, %v1120_v41, %v1121_v46  ;;  %v587_v55 = vrot.slane %v2343_v31, 2  ;;  %v588_v56 = vrot.slane %v2347_v42, 2  ;;  %v2389_v26 = vld [vmem:[%s2235_s19 + $0x148] sm:$0x3]  ;;  %v2394_v41 = vld [vmem:[%s2235_s19 + $0x150] sm:$0xff] }
  0x2a   : > { %v1125_v54 = vsel %vm362_vm1, %v1123_v37, %v1124_v47  ;;  %v1128_v57 = vsel %vm362_vm1, %v1126_v48, %v1127_v50  ;;  %v2358_v58 = vadd.f32 %v1122_v53, %v1046_v32  ;;  %v644_v15 = vadd.f32 %v2350_v51, %v2340_v28  ;;  %3677 = vst [vmem:[#allocation20_spill] sm:$0xff] %v2389_v26  ;;  %v2408_v53 = vld [vmem:[%s2235_s19 + $0x1e0] sm:$0xff] }
  0x2b   : > { %v2360_v61 = vadd.f32 %v1125_v54, %v1047_v38  ;;  %v586_v4 = vsel %vm583_vm0, %v584_v43, %v585_v52  ;;  %v2367_v6 = vadd.f32 %v1128_v57, %v1048_v45  ;;  %v589_v11 = vsel %vm583_vm0, %v587_v55, %v588_v56  ;;  %3678 = vst [vmem:[#allocation21_spill] sm:$0xff] %v2394_v41  ;;  %v2397_v45 = vld [vmem:[%s2235_s19 + $0x158] sm:$0x3]  ;;  %v2411_v54 = vld [vmem:[%s2235_s19 + $0x1e8] sm:$0x3] }
  0x2c   : > { %3674 = vst [vmem:[#allocation17_spill] sm:$0xff] %v2358_v58  ;;  %v624_v13 = vadd.f32 %v2350_v51, %v586_v4  ;;  %v1274_v17 = vadd.f32 %v2358_v58, %v2326_v14  ;;  %v625_v21 = vadd.f32 %v2364_v63, %v589_v11  ;;  %v645_v32 = vadd.f32 %v1990_v62, %v260_v36  ;;  %v2414_v62 = vld [vmem:[%s2235_s19 + $0x1f0] sm:$0xff]  ;;  %v2517_v51 = vld [vmem:[%s2235_s19 + $0x1a8] sm:$0x3] }
  0x2d   : > { %3675 = vst [vmem:[#allocation18_spill] sm:$0xff] %v2360_v61  ;;  %v1256_v16 = vadd.f32 %v2360_v61, %v2322_v10  ;;  %v1275_v18 = vadd.f32 %v2360_v61, %v2334_v23  ;;  %v1257_v22 = vadd.f32 %v2367_v6, %v2326_v14  ;;  %v646_v33 = vadd.f32 %v2364_v63, %v2343_v31 }
  0x2e   : > { %v634_v27 = vmul.f32 0.125, %v624_v13  ;;  %v1283_v35 = vmul.f32 0.375, %v1274_v17  ;;  %v635_v39 = vmul.f32 0.125, %v625_v21  ;;  %3679 = vst [vmem:[#allocation22_spill] sm:$0xff] %v2397_v45  ;;  %v647_v46 = vadd.f32 %v2380_v20, %v2347_v42  ;;  %3682 = vst [vmem:[#allocation25_spill] sm:$0xff] %v2411_v54 }
  0x2f   : > { %v1265_v34 = vmul.f32 0.125, %v1256_v16  ;;  %v1284_v38 = vmul.f32 0.375, %v1275_v18  ;;  %v1266_v40 = vmul.f32 0.125, %v1257_v22  ;;  %v664_v37 = vmul.f32 0.375, %v644_v15  ;;  %3683 = vst [vmem:[#allocation26_spill] sm:$0xff] %v2414_v62 }
  0x30   : > { %v665_v36 = vmul.f32 0.375, %v645_v32  ;;  %v666_v48 = vmul.f32 0.375, %v646_v33  ;;  %v994_v50 = vrot.slane %v2386_v25, 2  ;;  %v995_v43 = vrot.slane %v2389_v26, 2  ;;  %v2422_v17 = vld [vmem:[%s2235_s19 + $0x1f8] sm:$0x3] }
  0x31   : > { %v2401_v47 = vadd.f32 %v1283_v35, %v1265_v34  ;;  %v2405_v52 = vadd.f32 %v1284_v38, %v1266_v40  ;;  %v667_v55 = vmul.f32 0.375, %v647_v46  ;;  %v704_v56 = vrot.slane %v664_v37, 1  ;;  %3684 = vst [vmem:[#allocation27_spill] sm:$0xff] %v2422_v17  ;;  %v2432_v35 = vld [vmem:[%s2235_s19 + $0x60] sm:$0xff] }
  0x32   : > { %v705_v57 = vrot.slane %v665_v36, 1  ;;  %v707_v4 = vrot.slane %v666_v48, 1  ;;  %v996_v11 = vsel %vm583_vm0, %v994_v50, %v995_v43  ;;  %v997_v13 = vrot.slane %v2394_v41, 2  ;;  %v2440_v36 = vld [vmem:[%s2235_s19 + $0x68] sm:$0x3] }
  0x33   : > { %3680 = vst [vmem:[#allocation23_spill] sm:$0xff] %v2401_v47  ;;  %3681 = vst [vmem:[#allocation24_spill] sm:$0xff] %v2405_v52  ;;  %v998_v15 = vrot.slane %v2397_v45, 2  ;;  %v1424_v16 = vpack.c.bf16 %v2405_v52, %v2401_v47  ;;  %v708_v21 = vrot.slane %v667_v55, 1  ;;  %v1034_v22 = vadd.f32 %v2408_v53, %v996_v11  ;;  %v2475_v47 = vld [vmem:[%s2235_s19 + $0x110] sm:$0xff] }
  0x34   : > { %v706_v18 = vsel %vm362_vm1, %v704_v56, %v705_v57  ;;  %v1054_v33 = vadd.f32 %v2408_v53, %v2386_v25  ;;  %v1055_v34 = vadd.f32 %v2411_v54, %v2389_v26  ;;  %v1056_v37 = vadd.f32 %v2414_v62, %v2394_v41  ;;  %v2447_v56 = vld [vmem:[%s2235_s19 + $0x70] sm:$0xff]  ;;  %v2450_v57 = vld [vmem:[%s2235_s19 + $0x78] sm:$0x3] }
  0x35   : > { %v999_v32 = vsel %vm583_vm0, %v997_v13, %v998_v15  ;;  %1563 = vrot.lane.b32.xlu1 %v1424_v16, %s2183_s20  ;;  %v709_v38 = vsel %vm362_vm1, %v707_v4, %v708_v21  ;;  %v744_v40 = vadd.f32 %v706_v18, %v634_v27  ;;  %v1057_v50 = vadd.f32 %v2422_v17, %v2397_v45  ;;  %v2453_v13 = vld [vmem:[%s2235_s19 + $0x80] sm:$0xff]  ;;  %v2604_v17 = vld [vmem:[%s2235_s19 + $0x198] sm:$0x3] }
  0x36   : > { %v1035_v46 = vadd.f32 %v2414_v62, %v999_v32  ;;  %v2442_v48 = vadd.f32 %v709_v38, %v635_v39  ;;  %v1074_v43 = vmul.f32 0.375, %v1054_v33  ;;  %v1075_v55 = vmul.f32 0.375, %v1055_v34  ;;  %3686 = vst [vmem:[#allocation29_spill] sm:$0xff] %v2450_v57  ;;  %3687 = vst [vmem:[#allocation30_spill] sm:$0xff] %v2453_v13  ;;  %v2459_v32 = vld [vmem:[%s2235_s19 + $0x88] sm:$0x3] }
  0x37   : > { %v1044_v27 = vmul.f32 0.125, %v1034_v22  ;;  %v1076_v11 = vmul.f32 0.375, %v1056_v37  ;;  %v602_v15 = vrot.slane %v2432_v35, 2  ;;  %v1077_v39 = vmul.f32 0.375, %v1057_v50  ;;  %3688 = vst [vmem:[#allocation31_spill] sm:$0xff] %v2459_v32  ;;  %v2462_v34 = vld [vmem:[%s2235_s19 + $0x100] sm:$0xff] }
  0x38   : > { %3685 = vst [vmem:[#allocation28_spill] sm:$0xff] %v2442_v48  ;;  %v1045_v4 = vmul.f32 0.125, %v1035_v46  ;;  %v1114_v16 = vrot.slane %v1074_v43, 1  ;;  %v1115_v18 = vrot.slane %v1075_v55, 1  ;;  %v1255_v21 = vadd.f32 %v2358_v58, %v2442_v48  ;;  %v2469_v55 = vld [vmem:[%s2235_s19 + $0x108] sm:$0x3] }
  0x39   : > { %v1117_v33 = vrot.slane %v1076_v11, 1  ;;  %v603_v22 = vrot.slane %v2440_v36, 2  ;;  %v605_v38 = vrot.slane %v2447_v56, 2  ;;  %v606_v46 = vrot.slane %v2450_v57, 2 }
  0x3a   : > { %v1116_v37 = vsel %vm362_vm1, %v1114_v16, %v1115_v18  ;;  %v1118_v50 = vrot.slane %v1077_v39, 1  ;;  %v1264_v43 = vmul.f32 0.125, %v1255_v21  ;;  %v608_v52 = vrot.slane %v2453_v13, 2  ;;  %v2482_v39 = vld [vmem:[%s2235_s19 + $0x118] sm:$0x3] }
  0x3b   : > { %v2472_v11 = vadd.f32 %v1116_v37, %v1044_v27  ;;  %v604_v61 = vsel %vm583_vm0, %v602_v15, %v603_v22  ;;  %v607_v58 = vsel %vm583_vm0, %v605_v38, %v606_v46  ;;  %v609_v14 = vrot.slane %v2459_v32, 2  ;;  %3690 = vst [vmem:[#allocation33_spill] sm:$0xff] %v2482_v39  ;;  %v2493_v22 = vld [vmem:[%s2235_s19 + $0x120] sm:$0xff]  ;;  %v2496_v38 = vld [vmem:[%s2235_s19 + $0x128] sm:$0x3] }
  0x3c   : > { %v1119_v16 = vsel %vm362_vm1, %v1117_v33, %v1118_v50  ;;  %v630_v18 = vadd.f32 %v2462_v34, %v604_v61  ;;  %v631_v21 = vadd.f32 %v2475_v47, %v607_v58  ;;  %v656_v27 = vadd.f32 %v2462_v34, %v2432_v35  ;;  %3692 = vst [vmem:[#allocation35_spill] sm:$0xff] %v2493_v22 }
  0x3d   : > { %3689 = vst [vmem:[#allocation32_spill] sm:$0xff] %v2472_v11  ;;  %v2488_v37 = vadd.f32 %v1119_v16, %v1045_v4  ;;  %v1272_v15 = vadd.f32 %v2472_v11, %v2442_v48  ;;  %3693 = vst [vmem:[#allocation36_spill] sm:$0xff] %v2496_v38  ;;  %v610_v33 = vsel %vm583_vm0, %v608_v52, %v609_v14  ;;  %v2510_v52 = vld [vmem:[%s2235_s19 + $0x1a0] sm:$0xff] }
  0x3e   : > { %v657_v61 = vadd.f32 %v2469_v55, %v2440_v36  ;;  %v632_v58 = vadd.f32 %v2493_v22, %v610_v33  ;;  %v640_v46 = vmul.f32 0.125, %v630_v18  ;;  %v641_v50 = vmul.f32 0.125, %v631_v21 }
  0x3f   : > { %3691 = vst [vmem:[#allocation34_spill] sm:$0xff] %v2488_v37  ;;  %v658_v4 = vadd.f32 %v2475_v47, %v2447_v56  ;;  %v1254_v16 = vadd.f32 %v2488_v37, %v744_v40  ;;  %v1273_v48 = vadd.f32 %v2488_v37, %v2322_v10  ;;  %v1281_v11 = vmul.f32 0.375, %v1272_v15  ;;  %v2520_v10 = vld [vmem:[%s2235_s19 + $0x1b0] sm:$0xff] }
  0x40   : > { %v659_v14 = vadd.f32 %v2482_v39, %v2450_v57  ;;  %v642_v59 = vmul.f32 0.125, %v632_v58  ;;  %v660_v18 = vadd.f32 %v2493_v22, %v2453_v13  ;;  %v661_v21 = vadd.f32 %v2496_v38, %v2459_v32  ;;  %3694 = vst [vmem:[#allocation37_spill] sm:$0xff] %v2520_v10 }
  0x41   : > { %v676_v33 = vmul.f32 0.375, %v656_v27  ;;  %v1263_v40 = vmul.f32 0.125, %v1254_v16  ;;  %v1282_v28 = vmul.f32 0.375, %v1273_v48  ;;  %v677_v15 = vmul.f32 0.375, %v657_v61  ;;  %v2525_v27 = vld [vmem:[%s2235_s19 + $0x1b8] sm:$0x3] }
  0x42   : > { %v678_v37 = vmul.f32 0.375, %v658_v4  ;;  %v679_v24 = vmul.f32 0.375, %v659_v14  ;;  %v680_v58 = vmul.f32 0.375, %v660_v18  ;;  %v681_v19 = vmul.f32 0.375, %v661_v21  ;;  %3696 = vst [vmem:[#allocation39_spill] sm:$0xff] %v2525_v27  ;;  %v2528_v61 = vld [vmem:[%s2235_s19 + $0x1c0] sm:$0xff] }
  0x43   : > { %v722_v45 = vrot.slane %v676_v33, 1  ;;  %v1290_v13 = vadd.f32 %v1281_v11, %v1263_v40  ;;  %v2522_v22 = vadd.f32 %v1282_v28, %v1264_v43  ;;  %v723_v48 = vrot.slane %v677_v15, 1  ;;  %3697 = vst [vmem:[#allocation40_spill] sm:$0xff] %v2528_v61  ;;  %v2533_v18 = vld [vmem:[%s2235_s19 + $0x1c8] sm:$0x3]  ;;  %v2536_v28 = vld [vmem:[%s2235_s19 + $0x240] sm:$0xff] }
  0x44   : > { %v725_v16 = vrot.slane %v678_v37, 1  ;;  %v726_v4 = vrot.slane %v679_v24, 1  ;;  %v728_v32 = vrot.slane %v680_v58, 1  ;;  %v729_v38 = vrot.slane %v681_v19, 1  ;;  %3698 = vst [vmem:[#allocation41_spill] sm:$0xff] %v2533_v18  ;;  %v2545_v24 = vld [vmem:[%s2235_s19 + $0x250] sm:$0xff] }
  0x45   : > { %3695 = vst [vmem:[#allocation38_spill] sm:$0xff] %v2522_v22  ;;  %v1012_v14 = vrot.slane %v2510_v52, 2  ;;  %v1423_v11 = vpack.c.bf16 %v2522_v22, %v1290_v13  ;;  %v724_v43 = vsel %vm362_vm1, %v722_v45, %v723_v48  ;;  %v1013_v21 = vrot.slane %v2517_v51, 2  ;;  %v2542_v33 = vld [vmem:[%s2235_s19 + $0x248] sm:$0x3]  ;;  %3699 = vst [vmem:[#allocation42_spill] sm:$0xff] %v2545_v24 }
  0x46   : > { %v1015_v37 = vrot.slane %v2520_v10, 2  ;;  %v2548_v19 = vld [vmem:[%s2235_s19 + $0x258] sm:$0x3]  ;;  %v727_v40 = vsel %vm362_vm1, %v725_v16, %v726_v4  ;;  %v730_v13 = vsel %vm362_vm1, %v728_v32, %v729_v38  ;;  %v2552_v15 = vadd.f32 %v724_v43, %v640_v46  ;;  %v2557_v45 = vld [vmem:[%s2235_s19 + $0x260] sm:$0xff]  ;;  %v2560_v48 = vld [vmem:[%s2235_s19 + $0x268] sm:$0x3] }
  0x47   : > { %3700 = vst [vmem:[#allocation43_spill] sm:$0xff] %v2548_v19  ;;  %v1016_v58 = vrot.slane %v2525_v27, 2  ;;  %1561 = vrot.lane.b32.xlu0 %v1423_v11, %s2183_s20  ;;  %3701 = vst [vmem:[#allocation44_spill] sm:$0xff] %v2557_v45  ;;  %v2562_v22 = vadd.f32 %v727_v40, %v641_v50  ;;  %v2564_v26 = vadd.f32 %v730_v13, %v642_v59  ;;  %v1018_v16 = vrot.slane %v2528_v61, 2  ;;  %v2586_v40 = vld [vmem:[%s2235_s19 + $0x50] sm:$0xff] }
  0x48   : > { %3702 = vst [vmem:[#allocation45_spill] sm:$0xff] %v2560_v48  ;;  %v1014_v41 = vsel %vm583_vm0, %v1012_v14, %v1013_v21  ;;  %v1019_v38 = vrot.slane %v2533_v18, 2  ;;  %v1066_v4 = vadd.f32 %v2536_v28, %v2510_v52  ;;  %v1067_v59 = vadd.f32 %v2542_v33, %v2517_v51 }
  0x49   : > { %3703 = vst [vmem:[#allocation46_spill] sm:$0xff] %v2564_v26  ;;  %v1017_v32 = vsel %vm583_vm0, %v1015_v37, %v1016_v58  ;;  %v1040_v46 = vadd.f32 %v2536_v28, %v1014_v41  ;;  %v1068_v14 = vadd.f32 %v2545_v24, %v2520_v10  ;;  %v1069_v11 = vadd.f32 %v2548_v19, %v2525_v27  ;;  %v2593_v27 = vld [vmem:[%s2235_s19 + $0xf0] sm:$0xff]  ;;  %v2596_v19 = vld [vmem:[%s2235_s19 + $0xf8] sm:$0x3] }
  0x4a   : > { %v1041_v50 = vadd.f32 %v2545_v24, %v1017_v32  ;;  %v1020_v43 = vsel %vm583_vm0, %v1018_v16, %v1019_v38  ;;  %v1070_v41 = vadd.f32 %v2557_v45, %v2528_v61  ;;  %v1071_v37 = vadd.f32 %v2560_v48, %v2533_v18  ;;  %v2590_v24 = vld [vmem:[%s2235_s19 + $0x58] sm:$0x3] }
  0x4b   : > { %v1050_v21 = vmul.f32 0.125, %v1040_v46  ;;  %v1042_v13 = vadd.f32 %v2557_v45, %v1020_v43  ;;  %v1086_v32 = vmul.f32 0.375, %v1066_v4  ;;  %v1087_v10 = vmul.f32 0.375, %v1067_v59 }
  0x4c   : > { %v1051_v58 = vmul.f32 0.125, %v1041_v50  ;;  %v1088_v16 = vmul.f32 0.375, %v1068_v14  ;;  %v1089_v38 = vmul.f32 0.375, %v1069_v11  ;;  %v1090_v46 = vmul.f32 0.375, %v1070_v41 }
  0x4d   : > { %v1091_v61 = vmul.f32 0.375, %v1071_v37  ;;  %v1052_v18 = vmul.f32 0.125, %v1042_v13  ;;  %v1132_v48 = vrot.slane %v1086_v32, 1  ;;  %v1133_v25 = vrot.slane %v1087_v10, 1 }
  0x4e   : > { %v599_v50 = vrot.slane %v2586_v40, 2  ;;  %v1135_v4 = vrot.slane %v1088_v16, 1  ;;  %v1136_v59 = vrot.slane %v1089_v38, 1  ;;  %v1138_v43 = vrot.slane %v1090_v46, 1 }
  0x4f   : > { %v1139_v45 = vrot.slane %v1091_v61, 1  ;;  %v1134_v29 = vsel %vm362_vm1, %v1132_v48, %v1133_v25  ;;  %v600_v14 = vrot.slane %v2590_v24, 2  ;;  %v654_v11 = vadd.f32 %v2593_v27, %v2586_v40 }
  0x50   : > { %v655_v10 = vadd.f32 %v2596_v19, %v2590_v24  ;;  %v1137_v41 = vsel %vm362_vm1, %v1135_v4, %v1136_v59  ;;  %v2613_v13 = vadd.f32 %v1134_v29, %v1050_v21  ;;  %v1009_v25 = vrot.slane %v2599_v30, 2  ;;  %v2632_v21 = vld [vmem:[%s2235_s19 + $0x230] sm:$0xff] }
  0x51   : > { %v1140_v37 = vsel %vm362_vm1, %v1138_v43, %v1139_v45  ;;  %v2616_v61 = vadd.f32 %v1137_v41, %v1051_v58  ;;  %v601_v32 = vsel %vm583_vm0, %v599_v50, %v600_v14  ;;  %v674_v16 = vmul.f32 0.375, %v654_v11  ;;  %v2635_v58 = vld [vmem:[%s2235_s19 + $0x238] sm:$0x3] }
  0x52   : > { %v2618_v48 = vadd.f32 %v1140_v37, %v1052_v18  ;;  %v1278_v38 = vadd.f32 %v2613_v13, %v2562_v22  ;;  %v629_v46 = vadd.f32 %v2593_v27, %v601_v32  ;;  %v675_v4 = vmul.f32 0.375, %v655_v10 }
  0x53   : > { %3704 = vst [vmem:[#allocation47_spill] sm:$0xff] %v2616_v61  ;;  %v1010_v59 = vrot.slane %v2604_v17, 2  ;;  %v1260_v29 = vadd.f32 %v2616_v61, %v2552_v15  ;;  %v1279_v18 = vadd.f32 %v2616_v61, %v2564_v26  ;;  %v719_v50 = vrot.slane %v674_v16, 1 }
  0x54   : > { %3705 = vst [vmem:[#allocation48_spill] sm:$0xff] %v2618_v48  ;;  %v1261_v45 = vadd.f32 %v2618_v48, %v2562_v22  ;;  %v1287_v43 = vmul.f32 0.375, %v1278_v38  ;;  %v639_v14 = vmul.f32 0.125, %v629_v46  ;;  %v720_v11 = vrot.slane %v675_v4, 1 }
  0x55   : > { %v1011_v10 = vsel %vm583_vm0, %v1009_v25, %v1010_v59  ;;  %v1269_v41 = vmul.f32 0.125, %v1260_v29  ;;  %v1288_v32 = vmul.f32 0.375, %v1279_v18  ;;  %v1064_v61 = vadd.f32 %v2632_v21, %v2599_v30 }
  0x56   : > { %v1270_v37 = vmul.f32 0.125, %v1261_v45  ;;  %v1039_v62 = vadd.f32 %v2632_v21, %v1011_v10  ;;  %v721_v48 = vsel %vm362_vm1, %v719_v50, %v720_v11  ;;  %v1065_v26 = vadd.f32 %v2635_v58, %v2604_v17 }
  0x57   : > { %v378_v16 = vrot.slane %v2593_v27, 1  ;;  %v2645_v38 = vadd.f32 %v1287_v43, %v1269_v41  ;;  %v2649_v25 = vadd.f32 %v721_v48, %v639_v14  ;;  %v1084_v59 = vmul.f32 0.375, %v1064_v61 }
  0x58   : > { %v2647_v46 = vadd.f32 %v1288_v32, %v1270_v37  ;;  %v1049_v4 = vmul.f32 0.125, %v1039_v62  ;;  %v1085_v29 = vmul.f32 0.375, %v1065_v26  ;;  %v3580_v45 = vrot.slane %v2596_v19, 1 }
  0x59   : > { %3706 = vst [vmem:[#allocation49_spill] sm:$0xff] %v2645_v38  ;;  %v381_v18 = vrot.slane %v2462_v34, 1  ;;  %v1259_v11 = vadd.f32 %v2613_v13, %v2649_v25  ;;  %v1276_v43 = vadd.f32 %v2367_v6, %v2649_v25  ;;  %v3581_v10 = vrot.slane %v2469_v55, 1 }
  0x5a   : > { %3707 = vst [vmem:[#allocation50_spill] sm:$0xff] %v2647_v46  ;;  %v1426_v50 = vpack.c.bf16 %v2647_v46, %v2645_v38  ;;  %v1129_v48 = vrot.slane %v1084_v59, 1  ;;  %v1130_v14 = vrot.slane %v1085_v29, 1  ;;  %v380_v26 = vsel %vm362_vm1, %v378_v16, %v3580_v45 }
  0x5b   : > { %v384_v62 = vrot.slane %v2475_v47, 1  ;;  %v1268_v61 = vmul.f32 0.125, %v1259_v11  ;;  %v1285_v41 = vmul.f32 0.375, %v1276_v43  ;;  %v383_v37 = vsel %vm362_vm1, %v381_v18, %v3581_v10 }
  0x5c   : > { %1567 = vrot.lane.b32.xlu1 %v1426_v50, %s2183_s20  ;;  %v3582_v32 = vrot.slane %v2482_v39, 1  ;;  %v1131_v46 = vsel %vm362_vm1, %v1129_v48, %v1130_v14  ;;  %v423_v59 = vadd.f32 %v380_v26, %v2586_v40  ;;  %v425_v29 = vadd.f32 %v383_v37, %v2432_v35 }
  0x5d   : > { %v488_v16 = vrot.slane %v2586_v40, 1  ;;  %v2673_v45 = vadd.f32 %v1131_v46, %v1049_v4  ;;  %v3584_v11 = vrot.slane %v2590_v24, 1  ;;  %v491_v18 = vrot.slane %v2432_v35, 1 }
  0x5e   : > { %v386_v50 = vsel %vm362_vm1, %v384_v62, %v3582_v32  ;;  %v443_v10 = vmul.f32 0.125, %v423_v59  ;;  %v445_v48 = vmul.f32 0.125, %v425_v29  ;;  %v3585_v14 = vrot.slane %v2440_v36, 1 }
  0x5f   : > { %v427_v43 = vadd.f32 %v386_v50, %v2447_v56  ;;  %v1258_v26 = vadd.f32 %v2673_v45, %v2334_v23  ;;  %v1277_v40 = vadd.f32 %v2673_v45, %v2552_v15  ;;  %v490_v46 = vsel %vm362_vm1, %v488_v16, %v3584_v11 }
  0x60   : > { %v494_v4 = vrot.slane %v2447_v56, 1  ;;  %v493_v35 = vsel %vm362_vm1, %v491_v18, %v3585_v14  ;;  %v3586_v37 = vrot.slane %v2450_v57, 1  ;;  %v533_v59 = vadd.f32 %v2593_v27, %v490_v46 }
  0x61   : > { %v447_v62 = vmul.f32 0.125, %v427_v43  ;;  %v1267_v29 = vmul.f32 0.125, %v1258_v26  ;;  %v1286_v50 = vmul.f32 0.375, %v1277_v40  ;;  %v535_v32 = vadd.f32 %v2462_v34, %v493_v35 }
  0x62   : > { %v786_v38 = vrot.slane %v2314_v60, 1  ;;  %v496_v16 = vsel %vm362_vm1, %v494_v4, %v3586_v37  ;;  %v553_v56 = vmul.f32 0.375, %v533_v59  ;;  %v3601_v43 = vrot.slane %v2319_v5, 1 }
  0x63   : > { %v789_v11 = vrot.slane %v2632_v21, 1  ;;  %v2702_v18 = vadd.f32 %v1285_v41, %v1267_v29  ;;  %v2704_v14 = vadd.f32 %v1286_v50, %v1268_v61  ;;  %v537_v27 = vadd.f32 %v2475_v47, %v496_v16 }
  0x64   : > { %v555_v26 = vmul.f32 0.375, %v535_v32  ;;  %v2707_v40 = vadd.f32 %v553_v56, %v443_v10  ;;  %v788_v34 = vsel %vm362_vm1, %v786_v38, %v3601_v43  ;;  %v3599_v46 = vrot.slane %v2635_v58, 1 }
  0x65   : > { %3708 = vst [vmem:[#allocation51_spill] sm:$0xff] %v2702_v18  ;;  %3709 = vst [vmem:[#allocation52_spill] sm:$0xff] %v2704_v14  ;;  %v792_v4 = vrot.slane %v2536_v28, 1  ;;  %v1425_v35 = vpack.c.bf16 %v2704_v14, %v2702_v18  ;;  %v557_v41 = vmul.f32 0.375, %v537_v27  ;;  %v3598_v61 = vrot.slane %v2542_v33, 1  ;;  %v2852_v14 = vld [vmem:[%s2235_s19 + $0x90] sm:$0xff] }
  0x66   : > { %v2716_v59 = vadd.f32 %v555_v26, %v445_v48  ;;  %v791_v47 = vsel %vm362_vm1, %v789_v11, %v3599_v46  ;;  %v832_v10 = vadd.f32 %v2301_v44, %v788_v34  ;;  %v896_v38 = vrot.slane %v2301_v44, 1 }
  0x67   : > { %v3597_v32 = vrot.slane %v2304_v49, 1  ;;  %1565 = vrot.lane.b32.xlu0 %v1425_v35, %s2183_s20  ;;  %v2726_v29 = vadd.f32 %v557_v41, %v447_v62  ;;  %v794_v48 = vsel %vm362_vm1, %v792_v4, %v3598_v61  ;;  %v834_v50 = vadd.f32 %v2599_v30, %v791_v47 }
  0x68   : > { %v899_v16 = vrot.slane %v2599_v30, 1  ;;  %v836_v11 = vadd.f32 %v2510_v52, %v794_v48  ;;  %v852_v56 = vmul.f32 0.125, %v832_v10  ;;  %v3592_v27 = vrot.slane %v2604_v17, 1 }
  0x69   : > { %3710 = vst [vmem:[#allocation53_spill] sm:$0xff] %v2726_v29  ;;  %v898_v44 = vsel %vm362_vm1, %v896_v38, %v3597_v32  ;;  %v854_v26 = vmul.f32 0.125, %v834_v50  ;;  %v902_v62 = vrot.slane %v2510_v52, 1  ;;  %v3591_v34 = vrot.slane %v2517_v51, 1  ;;  %v3723_v32 = vld [vmem:[#allocation22_spill] sm:$0xff] }
  0x6a   : > { %v942_v4 = vadd.f32 %v2314_v60, %v898_v44  ;;  %v856_v35 = vmul.f32 0.125, %v836_v11  ;;  %v901_v30 = vsel %vm362_vm1, %v899_v16, %v3592_v27  ;;  %v366_v41 = vrot.slane %v2364_v63, 1 }
  0x6b   : > { %v3588_v47 = vrot.slane %v2380_v20, 1  ;;  %v904_v10 = vsel %vm362_vm1, %v902_v62, %v3591_v34  ;;  %v944_v38 = vadd.f32 %v2632_v21, %v901_v30  ;;  %v369_v48 = vrot.slane %v2253_v7, 1 }
  0x6c   : > { %v962_v52 = vmul.f32 0.375, %v942_v4  ;;  %v946_v60 = vadd.f32 %v2536_v28, %v904_v10  ;;  %v3587_v16 = vrot.slane %v2256_v8, 1  ;;  %v372_v11 = vrot.slane %v2259_v9, 1 }
  0x6d   : > { %v368_v50 = vsel %vm362_vm1, %v366_v41, %v3588_v47  ;;  %v964_v44 = vmul.f32 0.375, %v944_v38  ;;  %v3589_v62 = vrot.slane %v2264_v12, 1  ;;  %v476_v30 = vrot.slane %v2343_v31, 1 }
  0x6e   : > { %v2757_v37 = vadd.f32 %v962_v52, %v852_v56  ;;  %v415_v21 = vadd.f32 %v368_v50, %v2343_v31  ;;  %v966_v4 = vmul.f32 0.375, %v946_v60  ;;  %v371_v28 = vsel %vm362_vm1, %v369_v48, %v3587_v16 }
  0x6f   : > { %v3590_v41 = vrot.slane %v2347_v42, 1  ;;  %v2766_v10 = vadd.f32 %v964_v44, %v854_v26  ;;  %v374_v56 = vsel %vm362_vm1, %v372_v11, %v3589_v62  ;;  %v417_v52 = vadd.f32 %v371_v28, %v2238_v0 }
  0x70   : > { %v1307_v38 = vadd.f32 %v2757_v37, %v2716_v59  ;;  %v2774_v60 = vadd.f32 %v966_v4, %v856_v35  ;;  %v419_v50 = vadd.f32 %v374_v56, %v2244_v2  ;;  %v435_v48 = vmul.f32 0.125, %v415_v21 }
  0x71   : > { %v478_v31 = vsel %vm362_vm1, %v476_v30, %v3590_v41  ;;  %v1309_v26 = vadd.f32 %v2766_v10, %v2726_v29  ;;  %v1339_v16 = vadd.f32 %v2766_v10, %v2707_v40  ;;  %v437_v47 = vmul.f32 0.125, %v417_v52 }
  0x72   : > { %v1323_v44 = vmul.f32 0.125, %v1307_v38  ;;  %v1341_v11 = vadd.f32 %v2774_v60, %v2716_v59  ;;  %v439_v35 = vmul.f32 0.125, %v419_v50  ;;  %v479_v4 = vrot.slane %v2238_v0, 1 }
  0x73   : > { %v3593_v21 = vrot.slane %v2241_v1, 1  ;;  %v1325_v28 = vmul.f32 0.125, %v1309_v26  ;;  %v1355_v56 = vmul.f32 0.375, %v1339_v16  ;;  %v482_v30 = vrot.slane %v2244_v2, 1  ;;  %v3743_v1 = vld [vmem:[#allocation11_spill] sm:$0xff] }
  0x74   : > { %v3594_v62 = vrot.slane %v2247_v3, 1  ;;  %v1357_v41 = vmul.f32 0.375, %v1341_v11  ;;  %v525_v52 = vadd.f32 %v2364_v63, %v478_v31  ;;  %v774_v34 = vrot.slane %v2408_v53, 1  ;;  %v3727_v3 = vld [vmem:[#allocation36_spill] sm:$0xff] }
  0x75   : > { %v481_v38 = vsel %vm362_vm1, %v479_v4, %v3593_v21  ;;  %v2795_v50 = vadd.f32 %v1355_v56, %v1323_v44  ;;  %v3596_v2 = vrot.slane %v2411_v54, 1  ;;  %v3713_v4 = vld [vmem:[#allocation26_spill] sm:$0xff]  ;;  %v3714_v44 = vld [vmem:[#allocation27_spill] sm:$0xff]  ;;  %v3607_v61 = vrot.slane %v3723_v32, 1 }
  0x76   : > { %v484_v0 = vsel %vm362_vm1, %v482_v30, %v3594_v62  ;;  %v527_v16 = vadd.f32 %v2253_v7, %v481_v38  ;;  %v2802_v26 = vadd.f32 %v1357_v41, %v1325_v28  ;;  %v545_v27 = vmul.f32 0.375, %v525_v52  ;;  %v3717_v28 = vld [vmem:[#allocation9_spill] sm:$0xff]  ;;  %v3722_v62 = vld [vmem:[#allocation20_spill] sm:$0xff] }
  0x77   : > { %3711 = vst [vmem:[#allocation54_spill] sm:$0xff] %v2795_v50  ;;  %v529_v11 = vadd.f32 %v2259_v9, %v484_v0  ;;  %v777_v21 = vrot.slane %v3713_v4, 1  ;;  %v776_v31 = vsel %vm362_vm1, %v774_v34, %v3596_v2  ;;  %v3595_v56 = vrot.slane %v3714_v44, 1  ;;  %v3718_v0 = vld [vmem:[#allocation10_spill] sm:$0xff] }
  0x78   : > { %3712 = vst [vmem:[#allocation55_spill] sm:$0xff] %v2802_v26  ;;  %v547_v63 = vmul.f32 0.375, %v527_v16  ;;  %v1481_v30 = vpack.c.bf16 %v2802_v26, %v2795_v50  ;;  %v2812_v38 = vadd.f32 %v545_v27, %v435_v48  ;;  %v780_v52 = vrot.slane %v3717_v28, 1  ;;  %v3721_v48 = vld [vmem:[#allocation21_spill] sm:$0xff]  ;;  %v3751_v26 = vld [vmem:[#allocation28_spill] sm:$0xff] }
  0x79   : > { %v549_v7 = vmul.f32 0.375, %v529_v11  ;;  %v779_v9 = vsel %vm362_vm1, %v777_v21, %v3595_v56  ;;  %v3600_v16 = vrot.slane %v3718_v0, 1  ;;  %v3720_v11 = vld [vmem:[#allocation19_spill] sm:$0xff]  ;;  %v3606_v56 = vrot.slane %v3722_v62, 1  ;;  %v2129_v50 = vld [vmem:[%s2235_s19 + $0x210] sm:$0xff] }
  0x7a   : > { %3715 = vst [vmem:[#allocation26_spill] sm:$0xff] %v2812_v38  ;;  %v2814_v41 = vadd.f32 %v547_v63, %v437_v47  ;;  %1589 = vrot.lane.b32.xlu1 %v1481_v30, %s2184_s21  ;;  %v824_v27 = vadd.f32 %v3720_v11, %v776_v31  ;;  %v826_v47 = vadd.f32 %v3721_v48, %v779_v9  ;;  %v884_v63 = vrot.slane %v3720_v11, 1  ;;  %v3724_v30 = vld [vmem:[#allocation7_spill] sm:$0xff]  ;;  %v2836_v9 = vld [vmem:[%s2235_s19 + $0x130] sm:$0xff]  ;;  %v2839_v11 = vld [vmem:[%s2235_s19 + $0x138] sm:$0x3] }
  0x7b   : > { %v2822_v34 = vadd.f32 %v549_v7, %v439_v35  ;;  %v782_v21 = vsel %vm362_vm1, %v780_v52, %v3600_v16  ;;  %v887_v2 = vrot.slane %v3721_v48, 1  ;;  %v890_v31 = vrot.slane %v3724_v30, 1  ;;  %v3725_v16 = vld [vmem:[#allocation8_spill] sm:$0xff] }
  0x7c   : > { %3716 = vst [vmem:[#allocation56_spill] sm:$0xff] %v2814_v41  ;;  %v828_v35 = vadd.f32 %v3724_v30, %v782_v21  ;;  %v844_v7 = vmul.f32 0.125, %v824_v27  ;;  %v846_v46 = vmul.f32 0.125, %v826_v47  ;;  %v886_v52 = vsel %vm362_vm1, %v884_v63, %v3606_v56  ;;  %v3726_v21 = vld [vmem:[#allocation35_spill] sm:$0xff] }
  0x7d   : > { %3719 = vst [vmem:[#allocation9_spill] sm:$0xff] %v2822_v34  ;;  %v889_v48 = vsel %vm362_vm1, %v887_v2, %v3607_v61  ;;  %v3610_v43 = vrot.slane %v3725_v16, 1  ;;  %v387_v27 = vrot.slane %v3726_v21, 1  ;;  %v934_v30 = vadd.f32 %v2408_v53, %v886_v52  ;;  %v3728_v61 = vld [vmem:[#allocation30_spill] sm:$0xff] }
  0x7e   : > { %v848_v47 = vmul.f32 0.125, %v828_v35  ;;  %v936_v18 = vadd.f32 %v3713_v4, %v889_v48  ;;  %v3618_v12 = vrot.slane %v3727_v3, 1  ;;  %v390_v56 = vrot.slane %v2836_v9, 1  ;;  %v2863_v52 = vld [vmem:[%s2235_s19 + $0x98] sm:$0x3]  ;;  %v3733_v3 = vld [vmem:[#allocation43_spill] sm:$0xff] }
  0x7f   : > { %v892_v63 = vsel %vm362_vm1, %v890_v31, %v3610_v43  ;;  %v3616_v2 = vrot.slane %v2839_v11, 1  ;;  %v497_v57 = vrot.slane %v3728_v61, 1  ;;  %v954_v39 = vmul.f32 0.375, %v934_v30  ;;  %v3729_v43 = vld [vmem:[#allocation31_spill] sm:$0xff] }
  0x80   : > { %v938_v35 = vadd.f32 %v3717_v28, %v892_v63  ;;  %v956_v53 = vmul.f32 0.375, %v936_v18  ;;  %v389_v4 = vsel %vm362_vm1, %v387_v27, %v3618_v12  ;;  %v3617_v16 = vrot.slane %v3729_v43, 1  ;;  %v3731_v63 = vld [vmem:[#allocation16_spill] sm:$0xff] }
  0x81   : > { %v392_v31 = vsel %vm362_vm1, %v390_v56, %v3616_v2  ;;  %v429_v48 = vadd.f32 %v389_v4, %v3728_v61  ;;  %v500_v32 = vrot.slane %v2852_v14, 1  ;;  %v974_v28 = vadd.f32 %v954_v39, %v844_v7 }
  0x82   : > { %v958_v62 = vmul.f32 0.375, %v938_v35  ;;  %v2874_v30 = vadd.f32 %v956_v53, %v846_v46  ;;  %v431_v18 = vadd.f32 %v392_v31, %v2852_v14  ;;  %v499_v27 = vsel %vm362_vm1, %v497_v57, %v3617_v16  ;;  %v3732_v53 = vld [vmem:[#allocation42_spill] sm:$0xff] }
  0x83   : > { %v449_v0 = vmul.f32 0.125, %v429_v48  ;;  %v3624_v56 = vrot.slane %v2863_v52, 1  ;;  %v2885_v4 = vadd.f32 %v974_v28, %v2812_v38  ;;  %v1299_v39 = vadd.f32 %v974_v28, %v2814_v41 }
  0x84   : > { %3730 = vst [vmem:[#allocation19_spill] sm:$0xff] %v2874_v30  ;;  %v2882_v61 = vadd.f32 %v958_v62, %v848_v47  ;;  %v1301_v46 = vadd.f32 %v2874_v30, %v2822_v34  ;;  %v1331_v7 = vadd.f32 %v2874_v30, %v2812_v38  ;;  %v539_v57 = vadd.f32 %v3726_v21, %v499_v27  ;;  %v3734_v38 = vld [vmem:[#allocation44_spill] sm:$0xff]  ;;  %v3736_v21 = vld [vmem:[#allocation37_spill] sm:$0xff] }
  0x85   : > { %v502_v35 = vsel %vm362_vm1, %v500_v32, %v3624_v56  ;;  %v795_v62 = vrot.slane %v3732_v53, 1  ;;  %v1315_v47 = vmul.f32 0.125, %v1299_v39  ;;  %v451_v28 = vmul.f32 0.125, %v431_v18  ;;  %v3735_v32 = vld [vmem:[#allocation45_spill] sm:$0xff] }
  0x86   : > { %v1317_v31 = vmul.f32 0.125, %v1301_v46  ;;  %v1333_v48 = vadd.f32 %v2882_v61, %v2814_v41  ;;  %v1347_v2 = vmul.f32 0.375, %v1331_v7  ;;  %v541_v16 = vadd.f32 %v2836_v9, %v502_v35 }
  0x87   : > { %v559_v12 = vmul.f32 0.375, %v539_v57  ;;  %v3629_v43 = vrot.slane %v3733_v3, 1  ;;  %v798_v44 = vrot.slane %v3734_v38, 1  ;;  %v3628_v56 = vrot.slane %v3735_v32, 1 }
  0x88   : > { %v1349_v30 = vmul.f32 0.375, %v1333_v48  ;;  %v905_v27 = vrot.slane %v3736_v21, 1  ;;  %v2904_v54 = vadd.f32 %v1347_v2, %v1315_v47  ;;  %v561_v39 = vmul.f32 0.375, %v541_v16  ;;  %v3738_v48 = vld [vmem:[#allocation39_spill] sm:$0xff] }
  0x89   : > { %v2906_v46 = vadd.f32 %v559_v12, %v449_v0  ;;  %v797_v18 = vsel %vm362_vm1, %v795_v62, %v3629_v43  ;;  %v800_v35 = vsel %vm362_vm1, %v798_v44, %v3628_v56  ;;  %v3630_v41 = vrot.slane %v3738_v48, 1  ;;  %v3740_v0 = vld [vmem:[#allocation40_spill] sm:$0xff]  ;;  %v3742_v56 = vld [vmem:[#allocation41_spill] sm:$0xff] }
  0x8a   : > { %v2911_v7 = vadd.f32 %v1349_v30, %v1317_v31  ;;  %v838_v57 = vadd.f32 %v3736_v21, %v797_v18  ;;  %v840_v47 = vadd.f32 %v3740_v0, %v800_v35  ;;  %v908_v30 = vrot.slane %v3740_v0, 1  ;;  %v2125_v0 = vld [vmem:[%s2235_s19 + $0xe0] sm:$0xff] }
  0x8b   : > { %3737 = vst [vmem:[#allocation21_spill] sm:$0xff] %v2906_v46  ;;  %v2924_v44 = vadd.f32 %v561_v39, %v451_v28  ;;  %v907_v21 = vsel %vm362_vm1, %v905_v27, %v3630_v41  ;;  %v3638_v12 = vrot.slane %v3742_v56, 1  ;;  %v1311_v35 = vadd.f32 %v2774_v60, %v2906_v46  ;;  %v2936_v28 = vld [vmem:[%s2235_s19 + $0xe8] sm:$0x3] }
  0x8c   : > { %v1479_v62 = vpack.c.bf16 %v2911_v7, %v2904_v54  ;;  %v858_v31 = vmul.f32 0.125, %v838_v57  ;;  %v860_v18 = vmul.f32 0.125, %v840_v47  ;;  %v948_v43 = vadd.f32 %v3732_v53, %v907_v21  ;;  %v2127_v57 = vld [vmem:[%s2235_s19 + $0x40] sm:$0xff]  ;;  %v2941_v47 = vld [vmem:[%s2235_s19 + $0x48] sm:$0x3] }
  0x8d   : > { %3741 = vst [vmem:[#allocation7_spill] sm:$0xff] %v2924_v44  ;;  %v375_v16 = vrot.slane %v2125_v0, 1  ;;  %v3642_v39 = vrot.slane %v2936_v28, 1  ;;  %v485_v27 = vrot.slane %v2127_v57, 1  ;;  %v3641_v41 = vrot.slane %v2941_v47, 1 }
  0x8e   : > { %1585 = vrot.lane.b32.xlu0 %v1479_v62, %s2184_s21  ;;  %v910_v53 = vsel %vm362_vm1, %v908_v30, %v3638_v12  ;;  %v968_v21 = vmul.f32 0.375, %v948_v43  ;;  %v1327_v62 = vmul.f32 0.125, %v1311_v35  ;;  %v783_v48 = vrot.slane %v2129_v50, 1  ;;  %v2130_v43 = vld [vmem:[%s2235_s19 + $0x170] sm:$0xff] }
  0x8f   : > { %v950_v32 = vadd.f32 %v3734_v38, %v910_v53  ;;  %v377_v3 = vsel %vm362_vm1, %v375_v16, %v3642_v39  ;;  %v487_v2 = vsel %vm362_vm1, %v485_v27, %v3641_v41  ;;  %v3640_v42 = vrot.slane %v3743_v1, 1  ;;  %v2963_v53 = vld [vmem:[%s2235_s19 + $0x178] sm:$0x3] }
  0x90   : > { %v2956_v56 = vadd.f32 %v968_v21, %v858_v31  ;;  %v421_v30 = vadd.f32 %v2127_v57, %v377_v3  ;;  %v531_v12 = vadd.f32 %v2125_v0, %v487_v2  ;;  %v893_v35 = vrot.slane %v2130_v43, 1  ;;  %3744 = vst [vmem:[#allocation35_spill] sm:$0xff] %v2963_v53 }
  0x91   : > { %v970_v8 = vmul.f32 0.375, %v950_v32  ;;  %v785_v38 = vsel %vm362_vm1, %v783_v48, %v3640_v42  ;;  %v3645_v16 = vrot.slane %v2963_v53, 1  ;;  %v1383_v27 = vadd.f32 %v2367_v6, %v2552_v15 }
  0x92   : > { %v1313_v31 = vadd.f32 %v2956_v56, %v2924_v44  ;;  %v1343_v3 = vadd.f32 %v2956_v56, %v2726_v29  ;;  %v441_v2 = vmul.f32 0.125, %v421_v30  ;;  %v551_v0 = vmul.f32 0.375, %v531_v12 }
  0x93   : > { %v2972_v32 = vadd.f32 %v970_v8, %v860_v18  ;;  %v830_v57 = vadd.f32 %v2130_v43, %v785_v38  ;;  %v895_v48 = vsel %vm362_vm1, %v893_v35, %v3645_v16  ;;  %v1384_v21 = vadd.f32 %v2673_v45, %v2562_v22  ;;  %v3749_v16 = vld [vmem:[#allocation13_spill] sm:$0xff] }
  0x94   : > { %v1329_v42 = vmul.f32 0.125, %v1313_v31  ;;  %v1359_v41 = vmul.f32 0.375, %v1343_v3  ;;  %v2979_v39 = vadd.f32 %v551_v0, %v441_v2  ;;  %v940_v44 = vadd.f32 %v2129_v50, %v895_v48  ;;  %v3746_v2 = vld [vmem:[#allocation12_spill] sm:$0xff] }
  0x95   : > { %3745 = vst [vmem:[#allocation30_spill] sm:$0xff] %v2972_v32  ;;  %v1345_v1 = vadd.f32 %v2972_v32, %v2906_v46  ;;  %v850_v30 = vmul.f32 0.125, %v830_v57  ;;  %v1391_v12 = vmul.f32 0.125, %v1383_v27  ;;  %v1392_v8 = vmul.f32 0.125, %v1384_v21  ;;  %v3747_v0 = vld [vmem:[#allocation32_spill] sm:$0xff]  ;;  %v3752_v46 = vld [vmem:[#allocation17_spill] sm:$0xff] }
  0x96   : > { %v2983_v18 = vadd.f32 %v1359_v41, %v1327_v62  ;;  %v960_v43 = vmul.f32 0.375, %v940_v44  ;;  %v1303_v35 = vadd.f32 %v2882_v61, %v2979_v39  ;;  %v1337_v38 = vadd.f32 %v2757_v37, %v2979_v39 }
  0x97   : > { %v1361_v31 = vmul.f32 0.375, %v1345_v1  ;;  %v1399_v3 = vadd.f32 %v2673_v45, %v2649_v25  ;;  %v1400_v50 = vadd.f32 %v2613_v13, %v2552_v15  ;;  %v1379_v27 = vadd.f32 %v3747_v0, %v3746_v2  ;;  %v3750_v45 = vld [vmem:[#allocation34_spill] sm:$0xff] }
  0x98   : > { %v2997_v44 = vmul.f32 0.375, %v2885_v4  ;;  %v2999_v62 = vadd.f32 %v960_v43, %v850_v30  ;;  %v1319_v57 = vmul.f32 0.125, %v1303_v35  ;;  %v1380_v53 = vadd.f32 %v3750_v45, %v3749_v16 }
  0x99   : > { %v3001_v48 = vadd.f32 %v1361_v31, %v1329_v42  ;;  %v1407_v1 = vmul.f32 0.375, %v1399_v3  ;;  %v1408_v21 = vmul.f32 0.375, %v1400_v50  ;;  %v1353_v41 = vmul.f32 0.375, %v1337_v38 }
  0x9a   : > { %v1305_v15 = vadd.f32 %v2999_v62, %v2707_v40  ;;  %v1335_v0 = vadd.f32 %v2999_v62, %v2822_v34  ;;  %v1395_v4 = vadd.f32 %v3750_v45, %v3751_v26  ;;  %v1387_v35 = vmul.f32 0.125, %v1379_v27 }
  0x9b   : > { %3748 = vst [vmem:[#allocation16_spill] sm:$0xff] %v3001_v48  ;;  %v1482_v30 = vpack.c.bf16 %v3001_v48, %v2983_v18  ;;  %v1415_v42 = vadd.f32 %v1407_v1, %v1391_v12  ;;  %v1416_v43 = vadd.f32 %v1408_v21, %v1392_v8  ;;  %v1388_v50 = vmul.f32 0.125, %v1380_v53  ;;  %v3753_v1 = vld [vmem:[#allocation46_spill] sm:$0xff] }
  0x9c   : > { %v1321_v31 = vmul.f32 0.125, %v1305_v15  ;;  %v1351_v3 = vmul.f32 0.375, %v1335_v0  ;;  %v1396_v32 = vadd.f32 %v3752_v46, %v3746_v2  ;;  %v1403_v34 = vmul.f32 0.375, %v1395_v4 }
  0x9d   : > { %1591 = vrot.lane.b32.xlu1 %v1482_v30, %s2184_s21  ;;  %v1485_v29 = vpack.c.bf16 %v1416_v43, %v1415_v42  ;;  %v611_v38 = vrot.slane %v2852_v14, 2  ;;  %v612_v26 = vrot.slane %v2863_v52, 2  ;;  %v662_v8 = vadd.f32 %v2836_v9, %v2852_v14  ;;  %v3755_v43 = vld [vmem:[#allocation48_spill] sm:$0xff] }
  0x9e   : > { %v3018_v45 = vadd.f32 %v1351_v3, %v1319_v57  ;;  %v3020_v48 = vadd.f32 %v1353_v41, %v1321_v31  ;;  %v1404_v12 = vmul.f32 0.375, %v1396_v32  ;;  %v1411_v53 = vadd.f32 %v1403_v34, %v1387_v35 }
  0x9f   : > { %v613_v27 = vsel %vm583_vm0, %v611_v38, %v612_v26  ;;  %v663_v2 = vadd.f32 %v2839_v11, %v2863_v52  ;;  %v1385_v21 = vadd.f32 %v2613_v13, %v3753_v1  ;;  %v682_v34 = vmul.f32 0.375, %v662_v8  ;;  %v3754_v13 = vld [vmem:[#allocation47_spill] sm:$0xff] }
  0xa0   : > { %v1480_v41 = vpack.c.bf16 %v3020_v48, %v3018_v45  ;;  %v1412_v32 = vadd.f32 %v1404_v12, %v1388_v50  ;;  %v633_v14 = vadd.f32 %v2836_v9, %v613_v27  ;;  %v1401_v42 = vadd.f32 %v3754_v13, %v2562_v22  ;;  %v3756_v9 = vld [vmem:[#allocation18_spill] sm:$0xff] }
  0xa1   : > { %1601 = vrot.lane.b32.xlu1 %v1485_v29, %s2185_s22  ;;  %v683_v0 = vmul.f32 0.375, %v663_v2  ;;  %v1393_v4 = vmul.f32 0.125, %v1385_v21  ;;  %v1402_v35 = vadd.f32 %v3755_v43, %v3753_v1  ;;  %v1381_v31 = vadd.f32 %v3752_v46, %v2334_v23  ;;  %v2158_v1 = vld [vmem:[%s2235_s19 + $0x218] sm:$0x3] }
  0xa2   : > { %1587 = vrot.lane.b32.xlu0 %v1480_v41, %s2184_s21  ;;  %v1483_v30 = vpack.c.bf16 %v1412_v32, %v1411_v53  ;;  %v643_v3 = vmul.f32 0.125, %v633_v14  ;;  %v731_v50 = vrot.slane %v682_v34, 1  ;;  %v1382_v38 = vadd.f32 %v3756_v9, %v2649_v25 }
  0xa3   : > { %v732_v29 = vrot.slane %v683_v0, 1  ;;  %v1409_v26 = vmul.f32 0.375, %v1401_v42  ;;  %v1410_v12 = vmul.f32 0.375, %v1402_v35  ;;  %v1389_v8 = vmul.f32 0.125, %v1381_v31 }
  0xa4   : > { %v1397_v53 = vadd.f32 %v3756_v9, %v3749_v16  ;;  %v1390_v27 = vmul.f32 0.125, %v1382_v38  ;;  %v1398_v2 = vadd.f32 %v2367_v6, %v2334_v23  ;;  %v3757_v46 = vrot.slane %v2936_v28, 1 }
  0xa5   : > { %v733_v22 = vsel %vm362_vm1, %v731_v50, %v732_v29  ;;  %v1417_v25 = vadd.f32 %v1409_v26, %v1393_v4  ;;  %v3758_v14 = vrot.slane %v2596_v19, 1  ;;  %v3759_v0 = vrot.slane %v2469_v55, 1 }
  0xa6   : > { %v422_v21 = vadd.f32 %v2941_v47, %v3757_v46  ;;  %1597 = vrot.lane.b32.xlu0 %v1483_v30, %s2185_s22  ;;  %v3053_v41 = vadd.f32 %v733_v22, %v643_v3  ;;  %v1405_v32 = vmul.f32 0.375, %v1397_v53  ;;  %v1406_v34 = vmul.f32 0.375, %v1398_v2 }
  0xa7   : > { %v424_v16 = vadd.f32 %v3758_v14, %v2590_v24  ;;  %v426_v23 = vadd.f32 %v3759_v0, %v2440_v36  ;;  %v3760_v42 = vrot.slane %v2941_v47, 1  ;;  %v3761_v3 = vrot.slane %v2590_v24, 1  ;;  %v2133_v0 = vld [vmem:[%s2235_s19 + $0x228] sm:$0x3] }
  0xa8   : > { %v442_v6 = vmul.f32 0.125, %v422_v21  ;;  %v1386_v30 = vadd.f32 %v3754_v13, %v3053_v41  ;;  %v1413_v4 = vadd.f32 %v1405_v32, %v1389_v8  ;;  %v1414_v29 = vadd.f32 %v1406_v34, %v1390_v27 }
  0xa9   : > { %v532_v35 = vadd.f32 %v2936_v28, %v3760_v42  ;;  %v444_v31 = vmul.f32 0.125, %v424_v16  ;;  %v534_v50 = vadd.f32 %v2596_v19, %v3761_v3  ;;  %v446_v9 = vmul.f32 0.125, %v426_v23  ;;  %v2132_v28 = vld [vmem:[%s2235_s19 + $0x188] sm:$0x3] }
  0xaa   : > { %v3762_v38 = vrot.slane %v2440_v36, 1  ;;  %v1394_v22 = vmul.f32 0.125, %v1386_v30  ;;  %v3763_v2 = vrot.slane %v2319_v5, 1  ;;  %v3764_v8 = vrot.slane %v2635_v58, 1 }
  0xab   : > { %v552_v53 = vmul.f32 0.375, %v532_v35  ;;  %v554_v47 = vmul.f32 0.375, %v534_v50  ;;  %v1484_v46 = vpack.c.bf16 %v1414_v29, %v1413_v4  ;;  %v3765_v36 = vrot.slane %v2542_v33, 1 }
  0xac   : > { %v536_v26 = vadd.f32 %v2469_v55, %v3762_v38  ;;  %v833_v13 = vadd.f32 %v2132_v28, %v3763_v2  ;;  %v835_v24 = vadd.f32 %v2604_v17, %v3764_v8  ;;  %v1418_v21 = vadd.f32 %v1410_v12, %v1394_v22  ;;  %v2135_v28 = vld [vmem:[%s2235_s19 + $0x8] sm:$0x3] }
  0xad   : > { %v3078_v27 = vadd.f32 %v552_v53, %v442_v6  ;;  %v837_v55 = vadd.f32 %v2517_v51, %v3765_v36  ;;  %v3083_v32 = vadd.f32 %v554_v47, %v444_v31  ;;  %1599 = vrot.lane.b32.xlu0 %v1484_v46, %s2185_s22  ;;  %v3766_v23 = vrot.slane %v2304_v49, 1 }
  0xae   : > { %v556_v19 = vmul.f32 0.375, %v536_v26  ;;  %v853_v14 = vmul.f32 0.125, %v833_v13  ;;  %v855_v16 = vmul.f32 0.125, %v835_v24  ;;  %v3767_v42 = vrot.slane %v2604_v17, 1  ;;  %v2136_v13 = vld [vmem:[%s2235_s19 + $0x18] sm:$0x3] }
  0xaf   : > { %v857_v34 = vmul.f32 0.125, %v837_v55  ;;  %v943_v6 = vadd.f32 %v2133_v0, %v3766_v23  ;;  %v1486_v30 = vpack.c.bf16 %v1418_v21, %v1417_v25  ;;  %v3768_v12 = vrot.slane %v2517_v51, 1  ;;  %v2134_v25 = vld [vmem:[%s2235_s19 + $0xa8] sm:$0x3] }
  0xb0   : > { %v3086_v5 = vadd.f32 %v556_v19, %v446_v9  ;;  %v945_v35 = vadd.f32 %v2635_v58, %v3767_v42  ;;  %v1172_v31 = vadd.f32 %v2766_v10, %v2979_v39  ;;  %v1174_v3 = vadd.f32 %v2774_v60, %v2707_v40 }
  0xb1   : > { %v947_v4 = vadd.f32 %v2542_v33, %v3768_v12  ;;  %v963_v50 = vmul.f32 0.375, %v943_v6  ;;  %v1208_v49 = vadd.f32 %v2757_v37, %v2707_v40  ;;  %v1210_v17 = vadd.f32 %v2766_v10, %v2716_v59  ;;  %1603 = vrot.lane.b32.xlu1 %v1486_v30, %s2185_s22 }
  0xb2   : > { %v965_v29 = vmul.f32 0.375, %v945_v35  ;;  %v1190_v33 = vmul.f32 0.125, %v1172_v31  ;;  %v1192_v58 = vmul.f32 0.125, %v1174_v3  ;;  %v364_v9 = vrot.slane %v2134_v25, 1 }
  0xb3   : > { %v967_v51 = vmul.f32 0.375, %v947_v4  ;;  %v3107_v38 = vadd.f32 %v963_v50, %v853_v14  ;;  %v1226_v53 = vmul.f32 0.375, %v1208_v49  ;;  %v1228_v22 = vmul.f32 0.375, %v1210_v17  ;;  %v2137_v14 = vld [vmem:[%s2235_s19] sm:$0xff] }
  0xb4   : > { %v3109_v26 = vadd.f32 %v965_v29, %v855_v16  ;;  %v3769_v47 = vrot.slane %v3731_v63, 1  ;;  %v414_v2 = vadd.f32 %v2135_v28, %v364_v9  ;;  %v3770_v8 = vrot.slane %v2380_v20, 1  ;;  %v2138_v20 = vld [vmem:[%s2235_s19 + $0x28] sm:$0x3] }
  0xb5   : > { %v3111_v40 = vadd.f32 %v967_v51, %v857_v34  ;;  %v1209_v19 = vadd.f32 %v3107_v38, %v3083_v32  ;;  %v3126_v55 = vadd.f32 %v1226_v53, %v1190_v33  ;;  %v3130_v21 = vadd.f32 %v1228_v22, %v1192_v58  ;;  %v3771_v34 = vld [vmem:[#allocation5_spill] sm:$0xff]  ;;  %v2139_v33 = vld [vmem:[%s2235_s19 + $0xb8] sm:$0x3]  ;;  %v3773_v58 = vld [vmem:[#allocation15_spill] sm:$0xff] }
  0xb6   : > { %v365_v10 = vsel %vm362_vm1, %v3769_v47, %v364_v9  ;;  %v416_v24 = vadd.f32 %v2136_v13, %v3770_v8  ;;  %v1173_v46 = vadd.f32 %v3109_v26, %v3078_v27  ;;  %v1211_v36 = vadd.f32 %v3109_v26, %v3086_v5  ;;  %v2140_v22 = vld [vmem:[%s2235_s19 + $0xc8] sm:$0x3]  ;;  %v3775_v47 = vld [vmem:[#allocation3_spill] sm:$0xff] }
  0xb7   : > { %v1175_v63 = vadd.f32 %v3111_v40, %v3083_v32  ;;  %v413_v16 = vadd.f32 %v2137_v14, %v365_v10  ;;  %v3772_v0 = vrot.slane %v3771_v34, 1  ;;  %v1227_v42 = vmul.f32 0.375, %v1209_v19  ;;  %v2141_v8 = vld [vmem:[%s2235_s19 + $0x148] sm:$0x3] }
  0xb8   : > { %v1191_v6 = vmul.f32 0.125, %v1173_v46  ;;  %v1229_v35 = vmul.f32 0.375, %v1211_v36  ;;  %v1455_v30 = vrot.slane %v3126_v55, 1  ;;  %v1458_v4 = vrot.slane %v3130_v21, 1  ;;  %v3777_v46 = vld [vmem:[#allocation25_spill] sm:$0xff] }
  0xb9   : > { %v418_v23 = vadd.f32 %v2138_v20, %v3772_v0  ;;  %v1193_v12 = vmul.f32 0.125, %v1175_v63  ;;  %v433_v31 = vmul.f32 0.125, %v413_v16  ;;  %v434_v3 = vmul.f32 0.125, %v414_v2  ;;  %v3779_v63 = vld [vmem:[#allocation14_spill] sm:$0xff]  ;;  %v3781_v20 = vld [vmem:[#allocation27_spill] sm:$0xff] }
  0xba   : > { %v1245_v50 = vadd.f32 %v1227_v42, %v1191_v6  ;;  %v436_v29 = vmul.f32 0.125, %v416_v24  ;;  %v474_v17 = vrot.slane %v2135_v28, 1  ;;  %v3774_v9 = vrot.slane %v3773_v58, 1  ;;  %v2142_v16 = vld [vmem:[%s2235_s19 + $0x158] sm:$0x3]  ;;  %v2143_v6 = vld [vmem:[%s2235_s19 + $0xa0] sm:$0xff] }
  0xbb   : > { %v438_v49 = vmul.f32 0.125, %v418_v23  ;;  %v1247_v51 = vadd.f32 %v1229_v35, %v1193_v12  ;;  %v3776_v10 = vrot.slane %v3775_v47, 1  ;;  %v3778_v19 = vrot.slane %v3777_v46, 1  ;;  %v2144_v58 = vld [vmem:[%s2235_s19 + $0x168] sm:$0x3] }
  0xbc   : > { %v526_v53 = vadd.f32 %v2139_v33, %v3774_v9  ;;  %v1456_v2 = vrot.slane %v1245_v50, 1  ;;  %v3780_v24 = vrot.slane %v3779_v63, 1  ;;  %v524_v28 = vadd.f32 %v2134_v25, %v474_v17  ;;  %v3783_v9 = vld [vmem:[#allocation10_spill] sm:$0xff]  ;;  %v3786_v63 = vld [vmem:[#allocation20_spill] sm:$0xff] }
  0xbd   : > { %v528_v13 = vadd.f32 %v2140_v22, %v3776_v10  ;;  %v825_v36 = vadd.f32 %v2141_v8, %v3778_v19  ;;  %v3782_v34 = vrot.slane %v3781_v20, 1  ;;  %v1459_v23 = vrot.slane %v1247_v51, 1 }
  0xbe   : > { %v475_v14 = vsel %vm362_vm1, %v3780_v24, %v474_v17  ;;  %v546_v35 = vmul.f32 0.375, %v526_v53  ;;  %v3155_v33 = vsel %vm362_vm1, %v1455_v30, %v1456_v2  ;;  %v544_v50 = vmul.f32 0.375, %v524_v28  ;;  %v2145_v2 = vld [vmem:[%s2235_s19 + $0x1e8] sm:$0x3] }
  0xbf   : > { %v827_v0 = vadd.f32 %v2142_v16, %v3782_v34  ;;  %v523_v42 = vadd.f32 %v2143_v6, %v475_v14  ;;  %v548_v12 = vmul.f32 0.375, %v528_v13  ;;  %v3784_v22 = vrot.slane %v3783_v9, 1  ;;  %v3788_v14 = vld [vmem:[#allocation22_spill] sm:$0xff]  ;;  %v2147_v16 = vld [vmem:[%s2235_s19 + $0x208] sm:$0x3] }
  0xc0   : > { %v845_v17 = vmul.f32 0.125, %v825_v36  ;;  %v3161_v47 = vsel %vm362_vm1, %v1458_v4, %v1459_v23  ;;  %v3163_v10 = vadd.f32 %v546_v35, %v436_v29  ;;  %v564_v13 = vadd.f32 %v544_v50, %v434_v3  ;;  %v2146_v4 = vld [vmem:[%s2235_s19 + $0x1f8] sm:$0x3]  ;;  %v3793_v23 = vld [vmem:[#allocation56_spill] sm:$0xff]  ;;  %v3795_v35 = vld [vmem:[#allocation33_spill] sm:$0xff] }
  0xc1   : > { %v829_v25 = vadd.f32 %v2144_v58, %v3784_v22  ;;  %3785 = vst [vmem:[#allocation42_spill] sm:$0xff] %v3161_v47  ;;  %v543_v51 = vmul.f32 0.375, %v523_v42  ;;  %v3165_v53 = vadd.f32 %v548_v12, %v438_v49  ;;  %v1477_v30 = vpack.c.bf16 %v3161_v47, %v3155_v33  ;;  %v3790_v49 = vld [vmem:[#allocation8_spill] sm:$0xff]  ;;  %v3792_v3 = vld [vmem:[#allocation26_spill] sm:$0xff] }
  0xc2   : > { %v847_v8 = vmul.f32 0.125, %v827_v0  ;;  %v3787_v36 = vrot.slane %v3786_v63, 1  ;;  %v3789_v28 = vrot.slane %v3788_v14, 1  ;;  %v3791_v20 = vrot.slane %v3790_v49, 1  ;;  %v2148_v42 = vld [vmem:[%s2235_s19 + $0x78] sm:$0x3] }
  0xc3   : > { %v849_v46 = vmul.f32 0.125, %v829_v25  ;;  %v563_v19 = vadd.f32 %v543_v51, %v433_v31  ;;  %1577 = vrot.lane.b32.xlu1 %v1477_v30, %s2186_s23  ;;  %v1166_v0 = vadd.f32 %v2882_v61, %v3792_v3  ;;  %v3794_v31 = vld [vmem:[#allocation19_spill] sm:$0xff]  ;;  %v3796_v12 = vrot.slane %v3795_v35, 1  ;;  %v2149_v58 = vld [vmem:[%s2235_s19 + $0x88] sm:$0x3] }
  0xc4   : > { %v935_v24 = vadd.f32 %v2145_v2, %v3787_v36  ;;  %v937_v29 = vadd.f32 %v2146_v4, %v3789_v28  ;;  %v939_v34 = vadd.f32 %v2147_v16, %v3791_v20  ;;  %v1202_v6 = vadd.f32 %v3794_v31, %v3793_v23  ;;  %v3797_v9 = vld [vmem:[#allocation36_spill] sm:$0xff]  ;;  %v2150_v35 = vld [vmem:[%s2235_s19 + $0x118] sm:$0x3] }
  0xc5   : > { %v428_v50 = vadd.f32 %v2148_v42, %v3796_v12  ;;  %v3798_v22 = vrot.slane %v3797_v9, 1  ;;  %v1164_v63 = vadd.f32 %v3794_v31, %v563_v19  ;;  %v1184_v36 = vmul.f32 0.125, %v1166_v0  ;;  %v2152_v31 = vld [vmem:[%s2235_s19 + $0x1b8] sm:$0x3] }
  0xc6   : > { %v955_v51 = vmul.f32 0.375, %v935_v24  ;;  %v957_v2 = vmul.f32 0.375, %v937_v29  ;;  %v959_v30 = vmul.f32 0.375, %v939_v34  ;;  %v1220_v4 = vmul.f32 0.375, %v1202_v6  ;;  %v3799_v24 = vld [vmem:[#allocation29_spill] sm:$0xff]  ;;  %v3803_v6 = vld [vmem:[#allocation43_spill] sm:$0xff] }
  0xc7   : > { %v430_v25 = vadd.f32 %v2149_v58, %v3798_v22  ;;  %v448_v14 = vmul.f32 0.125, %v428_v50  ;;  %v1182_v3 = vmul.f32 0.125, %v1164_v63  ;;  %v3800_v29 = vrot.slane %v3799_v24, 1  ;;  %v2151_v34 = vld [vmem:[%s2235_s19 + $0x128] sm:$0x3]  ;;  %v3801_v58 = vld [vmem:[#allocation31_spill] sm:$0xff] }
  0xc8   : > { %v3190_v16 = vadd.f32 %v955_v51, %v845_v17  ;;  %v3192_v49 = vadd.f32 %v957_v2, %v847_v8  ;;  %v3194_v20 = vadd.f32 %v959_v30, %v849_v46  ;;  %v3196_v42 = vadd.f32 %v1220_v4, %v1184_v36 }
  0xc9   : > { %v450_v28 = vmul.f32 0.125, %v430_v25  ;;  %v538_v12 = vadd.f32 %v2150_v35, %v3800_v29  ;;  %v3802_v19 = vrot.slane %v3801_v58, 1  ;;  %v3804_v50 = vrot.slane %v3803_v6, 1  ;;  %v3805_v58 = vld [vmem:[#allocation45_spill] sm:$0xff] }
  0xca   : > { %v1165_v8 = vadd.f32 %v3192_v49, %v564_v13  ;;  %v1167_v46 = vadd.f32 %v3194_v20, %v3163_v10  ;;  %v1201_v9 = vadd.f32 %v3190_v16, %v3163_v10  ;;  %v1203_v22 = vadd.f32 %v3192_v49, %v3165_v53 }
  0xcb   : > { %v540_v0 = vadd.f32 %v2151_v34, %v3802_v19  ;;  %v839_v17 = vadd.f32 %v2152_v31, %v3804_v50  ;;  %v3215_v25 = vadd.f32 %v2997_v44, %v1182_v3  ;;  %v1446_v51 = vrot.slane %v3196_v42, 1  ;;  %v2153_v34 = vld [vmem:[%s2235_s19 + $0x1c8] sm:$0x3] }
  0xcc   : > { %v558_v2 = vmul.f32 0.375, %v538_v12  ;;  %v1183_v63 = vmul.f32 0.125, %v1165_v8  ;;  %v1185_v13 = vmul.f32 0.125, %v1167_v46  ;;  %v1219_v36 = vmul.f32 0.375, %v1201_v9  ;;  %v2154_v12 = vld [vmem:[%s2235_s19 + $0x258] sm:$0x3] }
  0xcd   : > { %v560_v30 = vmul.f32 0.375, %v540_v0  ;;  %v1221_v4 = vmul.f32 0.375, %v1203_v22  ;;  %v1443_v35 = vrot.slane %v3215_v25, 1  ;;  %v3806_v44 = vrot.slane %v3805_v58, 1  ;;  %v3807_v0 = vld [vmem:[#allocation39_spill] sm:$0xff]  ;;  %v3809_v22 = vld [vmem:[#allocation41_spill] sm:$0xff] }
  0xce   : > { %v3219_v24 = vadd.f32 %v558_v2, %v448_v14  ;;  %v1237_v19 = vadd.f32 %v1219_v36, %v1183_v63  ;;  %v859_v6 = vmul.f32 0.125, %v839_v17  ;;  %v3808_v50 = vrot.slane %v3807_v0, 1  ;;  %v2155_v9 = vld [vmem:[%s2235_s19 + $0x268] sm:$0x3]  ;;  %v3812_v2 = vld [vmem:[#allocation30_spill] sm:$0xff] }
  0xcf   : > { %v3221_v29 = vadd.f32 %v560_v30, %v450_v28  ;;  %v841_v3 = vadd.f32 %v2153_v34, %v3806_v44  ;;  %v1239_v31 = vadd.f32 %v1221_v4, %v1185_v13  ;;  %v3810_v57 = vrot.slane %v3809_v22, 1  ;;  %v3811_v28 = vld [vmem:[#allocation53_spill] sm:$0xff] }
  0xd0   : > { %v949_v8 = vadd.f32 %v2154_v12, %v3808_v50  ;;  %v1176_v14 = vadd.f32 %v2956_v56, %v2716_v59  ;;  %v1178_v30 = vadd.f32 %v3812_v2, %v3811_v28  ;;  %v1444_v58 = vrot.slane %v1237_v19, 1  ;;  %v3813_v19 = vld [vmem:[#allocation21_spill] sm:$0xff] }
  0xd1   : > { %v861_v46 = vmul.f32 0.125, %v841_v3  ;;  %v951_v15 = vadd.f32 %v2155_v9, %v3810_v57  ;;  %v1447_v34 = vrot.slane %v1239_v31, 1  ;;  %v1212_v17 = vadd.f32 %v2774_v60, %v3811_v28  ;;  %v3814_v9 = vld [vmem:[#allocation6_spill] sm:$0xff]  ;;  %v3816_v28 = vld [vmem:[#allocation4_spill] sm:$0xff] }
  0xd2   : > { %v969_v63 = vmul.f32 0.375, %v949_v8  ;;  %v1194_v36 = vmul.f32 0.125, %v1176_v14  ;;  %v1196_v4 = vmul.f32 0.125, %v1178_v30  ;;  %v1213_v44 = vadd.f32 %v3111_v40, %v3219_v24  ;;  %v2157_v14 = vld [vmem:[%s2235_s19 + $0xd8] sm:$0x3] }
  0xd3   : > { %v971_v13 = vmul.f32 0.375, %v951_v15  ;;  %v1445_v57 = vsel %vm362_vm1, %v1443_v35, %v1444_v58  ;;  %v3242_v59 = vsel %vm362_vm1, %v1446_v51, %v1447_v34  ;;  %v1214_v31 = vadd.f32 %v2956_v56, %v3813_v19  ;;  %v2156_v51 = vld [vmem:[%s2235_s19 + $0x38] sm:$0x3]  ;;  %v3818_v34 = vld [vmem:[#allocation11_spill] sm:$0xff] }
  0xd4   : > { %v3244_v3 = vadd.f32 %v969_v63, %v859_v6  ;;  %v1475_v60 = vpack.c.bf16 %v3242_v59, %v1445_v57  ;;  %v1230_v15 = vmul.f32 0.375, %v1212_v17  ;;  %v1231_v0 = vmul.f32 0.375, %v1213_v44  ;;  %v3820_v17 = vld [vmem:[#allocation35_spill] sm:$0xff] }
  0xd5   : > { %v3249_v12 = vadd.f32 %v971_v13, %v861_v46  ;;  %v1232_v8 = vmul.f32 0.375, %v1214_v31  ;;  %v3815_v6 = vrot.slane %v3814_v9, 1  ;;  %v3817_v30 = vrot.slane %v3816_v28, 1 }
  0xd6   : > { %v1177_v50 = vadd.f32 %v3244_v3, %v3086_v5  ;;  %v1215_v35 = vadd.f32 %v3244_v3, %v3221_v29  ;;  %1573 = vrot.lane.b32.xlu0 %v1475_v60, %s2186_s23  ;;  %v3261_v46 = vadd.f32 %v1230_v15, %v1194_v36  ;;  %v3819_v63 = vrot.slane %v3818_v34, 1 }
  0xd7   : > { %v420_v22 = vadd.f32 %v2156_v51, %v3815_v6  ;;  %v1179_v56 = vadd.f32 %v3249_v12, %v3219_v24  ;;  %v530_v58 = vadd.f32 %v2157_v14, %v3817_v30  ;;  %v3269_v31 = vadd.f32 %v1232_v8, %v1196_v4  ;;  %v3822_v4 = vld [vmem:[#allocation9_spill] sm:$0xff] }
  0xd8   : > { %v831_v13 = vadd.f32 %v3820_v17, %v3819_v63  ;;  %v1195_v44 = vmul.f32 0.125, %v1177_v50  ;;  %v1233_v57 = vmul.f32 0.375, %v1215_v35  ;;  %v1461_v9 = vrot.slane %v3261_v46, 1 }
  0xd9   : > { %v440_v51 = vmul.f32 0.125, %v420_v22  ;;  %v1197_v60 = vmul.f32 0.125, %v1179_v56  ;;  %v550_v6 = vmul.f32 0.375, %v530_v58  ;;  %v1464_v15 = vrot.slane %v3269_v31, 1 }
  0xda   : > { %v851_v47 = vmul.f32 0.125, %v831_v13  ;;  %v1249_v36 = vadd.f32 %v1231_v0, %v1195_v44  ;;  %v3821_v14 = vrot.slane %v3820_v17, 1  ;;  %v1168_v30 = vadd.f32 %v2999_v62, %v3793_v23 }
  0xdb   : > { %v1251_v50 = vadd.f32 %v1233_v57, %v1197_v60  ;;  %v3278_v35 = vadd.f32 %v550_v6, %v440_v51  ;;  %v1170_v8 = vadd.f32 %v2757_v37, %v3822_v4  ;;  %v1204_v22 = vadd.f32 %v2882_v61, %v3822_v4 }
  0xdc   : > { %v941_v28 = vadd.f32 %v2158_v1, %v3821_v14  ;;  %v1462_v56 = vrot.slane %v1249_v36, 1  ;;  %v1186_v58 = vmul.f32 0.125, %v1168_v30  ;;  %v1206_v34 = vadd.f32 %v2999_v62, %v2979_v39 }
  0xdd   : > { %v1465_v63 = vrot.slane %v1251_v50, 1  ;;  %v1171_v1 = vadd.f32 %v3107_v38, %v3278_v35  ;;  %v1188_v23 = vmul.f32 0.125, %v1170_v8  ;;  %v1205_v17 = vadd.f32 %v3194_v20, %v3278_v35 }
  0xde   : > { %v961_v0 = vmul.f32 0.375, %v941_v28  ;;  %v3291_v13 = vsel %vm362_vm1, %v1461_v9, %v1462_v56  ;;  %v1222_v61 = vmul.f32 0.375, %v1204_v22  ;;  %v1224_v44 = vmul.f32 0.375, %v1206_v34 }
  0xdf   : > { %v3296_v57 = vsel %vm362_vm1, %v1464_v15, %v1465_v63  ;;  %v1189_v51 = vmul.f32 0.125, %v1171_v1  ;;  %v1223_v39 = vmul.f32 0.375, %v1205_v17  ;;  %v1308_v62 = vadd.f32 %v3107_v38, %v3086_v5 }
  0xe0   : > { %v3293_v37 = vadd.f32 %v961_v0, %v851_v47  ;;  %v1478_v60 = vpack.c.bf16 %v3296_v57, %v3291_v13  ;;  %v3306_v9 = vadd.f32 %v1222_v61, %v1186_v58  ;;  %v3308_v36 = vadd.f32 %v1224_v44, %v1188_v23 }
  0xe1   : > { %v1310_v15 = vadd.f32 %v3109_v26, %v3219_v24  ;;  %v1324_v14 = vmul.f32 0.125, %v1308_v62  ;;  %v1340_v28 = vadd.f32 %v3109_v26, %v3083_v32  ;;  %v1342_v8 = vadd.f32 %v3111_v40, %v3086_v5 }
  0xe2   : > { %v1169_v6 = vadd.f32 %v3293_v37, %v3165_v53  ;;  %v1207_v47 = vadd.f32 %v3293_v37, %v3078_v27  ;;  %1579 = vrot.lane.b32.xlu1 %v1478_v60, %s2186_s23  ;;  %v1449_v4 = vrot.slane %v3306_v9, 1  ;;  %v1452_v22 = vrot.slane %v3308_v36, 1 }
  0xe3   : > { %v1326_v56 = vmul.f32 0.125, %v1310_v15  ;;  %v1356_v0 = vmul.f32 0.375, %v1340_v28  ;;  %v1300_v58 = vadd.f32 %v3190_v16, %v3165_v53  ;;  %v1358_v1 = vmul.f32 0.375, %v1342_v8 }
  0xe4   : > { %v1187_v30 = vmul.f32 0.125, %v1169_v6  ;;  %v1225_v50 = vmul.f32 0.375, %v1207_v47  ;;  %v1302_v26 = vadd.f32 %v3192_v49, %v3278_v35  ;;  %v1332_v61 = vadd.f32 %v3192_v49, %v3163_v10 }
  0xe5   : > { %v1372_v23 = vadd.f32 %v1356_v0, %v1324_v14  ;;  %v1316_v17 = vmul.f32 0.125, %v1300_v58  ;;  %v1334_v5 = vadd.f32 %v3194_v20, %v3165_v53  ;;  %v1374_v60 = vadd.f32 %v1358_v1, %v1326_v56 }
  0xe6   : > { %v1241_v34 = vadd.f32 %v1223_v39, %v1187_v30  ;;  %v1243_v63 = vadd.f32 %v1225_v50, %v1189_v51  ;;  %v1318_v6 = vmul.f32 0.125, %v1302_v26  ;;  %v1348_v16 = vmul.f32 0.375, %v1332_v61  ;;  %v3825_v50 = vld [vmem:[#allocation54_spill] sm:$0xff] }
  0xe7   : > { %v1516_v47 = vrot.slane %v1372_v23, 1  ;;  %v1350_v39 = vmul.f32 0.375, %v1334_v5  ;;  %v3823_v51 = vrot.slane %v2839_v11, 1  ;;  %v1519_v10 = vrot.slane %v1374_v60, 1 }
  0xe8   : > { %v1450_v44 = vrot.slane %v1241_v34, 1  ;;  %v1453_v62 = vrot.slane %v1243_v63, 1  ;;  %v3824_v53 = vrot.slane %v2863_v52, 1  ;;  %v3826_v8 = vrot.slane %v3825_v50, 1  ;;  %v3827_v34 = vld [vmem:[#allocation55_spill] sm:$0xff]  ;;  %v2027_v50 = vld [vmem:[%s2235_s19 + $0x1d0] sm:$0xff] }
  0xe9   : > { %v432_v15 = vadd.f32 %v3823_v51, %v2863_v52  ;;  %v1364_v0 = vadd.f32 %v1348_v16, %v1316_v17  ;;  %v1366_v58 = vadd.f32 %v1350_v39, %v1318_v6  ;;  %v1312_v52 = vadd.f32 %v3111_v40, %v3221_v29  ;;  %v2047_v39 = vld [vmem:[%s2235_s19 + $0x270] sm:$0xff] }
  0xea   : > { %v3331_v14 = vsel %vm362_vm1, %v1449_v4, %v1450_v44  ;;  %v3334_v28 = vsel %vm362_vm1, %v1452_v22, %v1453_v62  ;;  %v542_v49 = vadd.f32 %v2839_v11, %v3824_v53  ;;  %v1517_v56 = vsel %vm362_vm1, %v3826_v8, %v1516_v47  ;;  %v2048_v53 = vld [vmem:[%s2235_s19 + $0x278] sm:$0x3] }
  0xeb   : > { %v1476_v30 = vpack.c.bf16 %v3334_v28, %v3331_v14  ;;  %v3828_v4 = vrot.slane %v3827_v34, 1  ;;  %v452_v22 = vmul.f32 0.125, %v432_v15  ;;  %v1504_v26 = vrot.slane %v1364_v0, 1  ;;  %v2028_v8 = vld [vmem:[%s2235_s19 + $0x1d8] sm:$0x3] }
  0xec   : > { %v562_v1 = vmul.f32 0.375, %v542_v49  ;;  %v1507_v23 = vrot.slane %v1366_v58, 1  ;;  %v1344_v61 = vadd.f32 %v3244_v3, %v3219_v24  ;;  %v1328_v5 = vmul.f32 0.125, %v1312_v52 }
  0xed   : > { %v1520_v63 = vsel %vm362_vm1, %v3828_v4, %v1519_v10  ;;  %1575 = vrot.lane.b32.xlu0 %v1476_v30, %s2186_s23  ;;  %v1346_v44 = vadd.f32 %v3249_v12, %v3221_v29  ;;  %v1304_v62 = vadd.f32 %v3194_v20, %v3078_v27  ;;  %v3829_v40 = vrot.slane %v2904_v54, 1 }
  0xee   : > { %v1537_v11 = vpack.c.bf16 %v1520_v63, %v1517_v56  ;;  %v3352_v17 = vadd.f32 %v562_v1, %v452_v22  ;;  %v3830_v24 = vrot.slane %v2911_v7, 1  ;;  %v1360_v47 = vmul.f32 0.375, %v1344_v61  ;;  %v3831_v56 = vld [vmem:[#allocation16_spill] sm:$0xff] }
  0xef   : > { %v1505_v60 = vsel %vm362_vm1, %v3829_v40, %v1504_v26  ;;  %v1306_v16 = vadd.f32 %v3293_v37, %v3083_v32  ;;  %v1362_v15 = vmul.f32 0.375, %v1346_v44  ;;  %v1320_v10 = vmul.f32 0.125, %v1304_v62 }
  0xf0   : > { %1613 = vrot.lane.b32.xlu1 %v1537_v11, %s2187_s24  ;;  %v1508_v6 = vsel %vm362_vm1, %v3830_v24, %v1507_v23  ;;  %v1314_v20 = vadd.f32 %v3244_v3, %v3352_v17  ;;  %v1376_v54 = vadd.f32 %v1360_v47, %v1328_v5  ;;  %v1336_v30 = vadd.f32 %v3293_v37, %v3278_v35  ;;  %v3832_v24 = vld [vmem:[#allocation7_spill] sm:$0xff] }
  0xf1   : > { %v1535_v51 = vpack.c.bf16 %v1508_v6, %v1505_v60  ;;  %v1322_v49 = vmul.f32 0.125, %v1306_v16  ;;  %v1338_v7 = vadd.f32 %v3107_v38, %v3078_v27  ;;  %v1521_v32 = vrot.slane %v2983_v18, 1 }
  0xf2   : > { %v1524_v0 = vrot.slane %v3831_v56, 1  ;;  %v1330_v3 = vmul.f32 0.125, %v1314_v20  ;;  %v801_v58 = vrot.slane %v2047_v39, 1  ;;  %v1522_v34 = vrot.slane %v1376_v54, 1 }
  0xf3   : > { %1609 = vrot.lane.b32.xlu0 %v1535_v51, %s2187_s24  ;;  %v1352_v4 = vmul.f32 0.375, %v1336_v30  ;;  %v1354_v63 = vmul.f32 0.375, %v1338_v7  ;;  %v802_v22 = vrot.slane %v2048_v53, 1  ;;  %v1509_v1 = vrot.slane %v3018_v45, 1 }
  0xf4   : > { %v1378_v35 = vadd.f32 %v1362_v15, %v1330_v3  ;;  %v911_v37 = vrot.slane %v2027_v50, 1  ;;  %v912_v52 = vrot.slane %v2028_v8, 1  ;;  %v1512_v27 = vrot.slane %v3020_v48, 1 }
  0xf5   : > { %v1368_v38 = vadd.f32 %v1352_v4, %v1320_v10  ;;  %v1370_v11 = vadd.f32 %v1354_v63, %v1322_v49  ;;  %v803_v18 = vsel %vm362_vm1, %v801_v58, %v802_v22  ;;  %v1523_v26 = vsel %vm362_vm1, %v1521_v32, %v1522_v34 }
  0xf6   : > { %v1525_v23 = vrot.slane %v1378_v35, 1  ;;  %v842_v61 = vadd.f32 %v2027_v50, %v803_v18  ;;  %v913_v5 = vsel %vm362_vm1, %v911_v37, %v912_v52  ;;  %v1216_v6 = vadd.f32 %v3812_v2, %v3832_v24  ;;  %v3837_v24 = vld [vmem:[#allocation49_spill] sm:$0xff] }
  0xf7   : > { %v1510_v44 = vrot.slane %v1368_v38, 1  ;;  %v1513_v62 = vrot.slane %v1370_v11, 1  ;;  %v952_v40 = vadd.f32 %v2047_v39, %v913_v5  ;;  %v1021_v15 = vrot.slane %v2027_v50, 2 }
  0xf8   : > { %v1526_v45 = vsel %vm362_vm1, %v1524_v0, %v1525_v23  ;;  %v862_v60 = vmul.f32 0.125, %v842_v61  ;;  %v1022_v10 = vrot.slane %v2028_v8, 2  ;;  %v1072_v54 = vadd.f32 %v2047_v39, %v2027_v50  ;;  %v3834_v61 = vld [vmem:[#allocation23_spill] sm:$0xff] }
  0xf9   : > { %v1538_v48 = vpack.c.bf16 %v1526_v45, %v1523_v26  ;;  %v1511_v47 = vsel %vm362_vm1, %v1509_v1, %v1510_v44  ;;  %v1514_v16 = vsel %vm362_vm1, %v1512_v27, %v1513_v62  ;;  %v972_v51 = vmul.f32 0.375, %v952_v40 }
  0xfa   : > { %v1536_v20 = vpack.c.bf16 %v1514_v16, %v1511_v47  ;;  %v1541_v49 = vpack.c.bf16 %v3261_v46, %v3130_v21  ;;  %v1073_v7 = vadd.f32 %v2048_v53, %v2028_v8  ;;  %v1539_v2 = vpack.c.bf16 %v3306_v9, %v3196_v42  ;;  %v2123_v16 = vld [vmem:[%s3505_s1 + $0x8] sm:$0xff]  }
  0xfb   : > { %1615 = vrot.lane.b32.xlu1 %v1538_v48, %s2187_s24  ;;  %v992_v30 = vadd.f32 %v972_v51, %v862_v60  ;;  %v1023_v32 = vsel %vm583_vm0, %v1021_v15, %v1022_v10  ;;  %v1092_v56 = vmul.f32 0.375, %v1072_v54  ;;  %v1553_v0 = vpack.c.bf16 %v3331_v14, %v3242_v59  ;;  %v3836_v60 = vld [vmem:[#allocation52_spill] sm:$0xff]  ;;  %v2124_v54 = vld [vmem:[%s3505_s1 + $0x10] ss:$0 sps:$4 sm:$0x33]  }
  0xfc   : > { %1611 = vrot.lane.b32.xlu0 %v1536_v20, %s2187_s24  ;;  %v1234_v3 = vmul.f32 0.375, %v1216_v6  ;;  %v1043_v58 = vadd.f32 %v2047_v39, %v1023_v32  ;;  %v1093_v34 = vmul.f32 0.375, %v1073_v7  ;;  %v1540_v4 = vpack.c.bf16 %v3126_v55, %v3308_v36  ;;  %v3838_v20 = vld [vmem:[#allocation24_spill] sm:$0xff]  ;;  %v3841_v32 = vld [vmem:[#allocation42_spill] sm:$0xff] }
  0xfd   : > { %v1180_v50 = vadd.f32 %v992_v30, %v3813_v19  ;;  %v1141_v63 = vrot.slane %v1092_v56, 1  ;;  %v843_v1 = vadd.f32 %v2028_v8, %v802_v22  ;;  %v953_v35 = vadd.f32 %v2048_v53, %v912_v52  ;;  %v3840_v30 = vld [vmem:[#allocation50_spill] sm:$0xff] }
  0xfe   : > { %v1053_v27 = vmul.f32 0.125, %v1043_v58  ;;  %v1142_v38 = vrot.slane %v1093_v34, 1  ;;  %v1554_v11 = vpack.c.bf16 %v3155_v33, %v3334_v28  ;;  %v1280_v19 = vadd.f32 %v3755_v43, %v3053_v41  ;;  %v3833_v41 = vld [vmem:[#allocation38_spill] sm:$0xff]  ;;  %v1564_v34 = vpop.permute.xlu1 %1563 }
  0xff   : > { %1625 = vrot.lane.b32.xlu1 %v1541_v49, %s2188_s25  ;;  %v1198_v37 = vmul.f32 0.125, %v1180_v50  ;;  %v863_v39 = vmul.f32 0.125, %v843_v1  ;;  %v973_v18 = vmul.f32 0.375, %v953_v35  ;;  %v1217_v26 = vadd.f32 %v3249_v12, %v3352_v17  ;;  %v2122_v12 = vld [vmem:[%s3505_s1] sm:$0xff]   ;;  %v3835_v17 = vld [vmem:[#allocation46_spill] sm:$0xff] }
 0x100   : > { %1621 = vrot.lane.b32.xlu0 %v1539_v2, %s2188_s25  ;;  %v1143_v53 = vsel %vm362_vm1, %v1141_v63, %v1142_v38  ;;  %v1420_v8 = vpack.c.bf16 %v3308_v36, %v3306_v9  ;;  %v1419_v22 = vpack.c.bf16 %v3196_v42, %v3215_v25  ;;  %v1422_v28 = vpack.c.bf16 %v3269_v31, %v3261_v46 }
 0x101   : > { %v1252_v23 = vadd.f32 %v1234_v3, %v1198_v37  ;;  %v1163_v52 = vadd.f32 %v1143_v53, %v1053_v27  ;;  %v993_v33 = vadd.f32 %v973_v18, %v863_v39  ;;  %v1543_v5 = vpack.c.bf16 %v3834_v61, %v3833_v41  ;;  %2067 = vmatprep.subr.bf16.mxu0 %v2122_v12 }
 0x102   : > { %v1289_v62 = vmul.f32 0.375, %v1280_v19  ;;  %v1235_v45 = vmul.f32 0.375, %v1217_v26  ;;  %v1545_v6 = vpack.c.bf16 %v3837_v24, %v3836_v60  ;;  %2081 = vmatprep.subr.bf16.mxu1 %v2122_v12  ;;  %2068 = vmatpush3.bf16.msra.mxu0 %v2122_v12  ;;  %v1555_v56 = vpack.c.bf16 %v3291_v13, %v3841_v32  ;;  %v1568_v63 = vpop.permute.xlu1 %1567 }
 0x103   : > { %v1542_v43 = vpack.c.bf16 %v1252_v23, %v3269_v31  ;;  %v1262_v44 = vadd.f32 %v1163_v52, %v3835_v17  ;;  %v1181_v40 = vadd.f32 %v993_v33, %v3221_v29  ;;  %2084 = vmatpush3.bf16.msra.mxu1 %v2122_v12  ;;  %v3839_v29 = vld [vmem:[#allocation51_spill] sm:$0xff]  ;;  %2069 = vmatprep.subr.bf16.mxu0 %v2123_v16  ;;  %v1549_v49 = vrot.slane %v1252_v23, 1 }
 0x104   : > { %1623 = vrot.lane.b32.xlu0 %v1540_v4, %s2188_s25  ;;  %v1544_v15 = vpack.c.bf16 %v3839_v29, %v3838_v20  ;;  %2082 = vmatprep.subr.bf16.mxu1 %v2123_v16  ;;  %v1784_v50 = vsel %vm1782_vm2, %v2124_v54, 0  ;;  %v1562_v4 = vpop.permute.xlu0 %1561 }
 0x105   : > { %1627 = vrot.lane.b32.xlu1 %v1542_v43, %s2188_s25  ;;  %v1271_v48 = vmul.f32 0.125, %v1262_v44  ;;  %v1199_v47 = vmul.f32 0.125, %v1181_v40  ;;  %v1421_v43 = vpack.c.bf16 %v3130_v21, %v3126_v55  ;;  %v1665_v21 = vsel %vm1653_vm3, %v1422_v28, %v1568_v63 }
 0x106   : > { %2070 = vmatpush3.bf16.msra.mxu0 %v2123_v16  ;;  %v1590_v13 = vpop.permute.xlu1 %1589 }
 0x107   : > { %v1298_v51 = vadd.f32 %v1289_v62, %v1271_v48  ;;  %v1253_v10 = vadd.f32 %v1235_v45, %v1199_v47  ;;  %2085 = vmatpush3.bf16.msra.mxu1 %v2123_v16  ;;  %2087 = vmatprep.subr.msk.bf16.mxu0 %vm1782_vm2, %v2124_v54  ;;  %v1659_v45 = vsel %vm1653_vm3, %v1420_v8, %v1564_v34 }
 0x108   : > { %1633 = vrot.lane.b32.xlu0 %v1543_v5, %s2189_s30  ;;  %2088 = vmatprep.subr.msk.bf16.mxu1 %vm1782_vm2, %v2124_v54  ;;  %v1566_v1 = vpop.permute.xlu0 %1565  ;;  %v1656_v5 = vsel %vm1653_vm3, %v1419_v22, %v1562_v4 }
 0x109   : > { %1637 = vrot.lane.b32.xlu1 %v1545_v6, %s2189_s30  ;;  %v1546_v7 = vpack.c.bf16 %v1298_v51, %v3840_v30  ;;  %v1550_v2 = vrot.slane %v1253_v10, 1  ;;  %v1662_v12 = vsel %vm1653_vm3, %v1421_v43, %v1566_v1 }
 0x10a   : > { %2072 = vmatpush3.bf16.msra.mxu0 %v1784_v50 }
 0x10b   : > { %v1551_v3 = vsel %vm362_vm1, %v1549_v49, %v1550_v2  ;;  %2086 = vmatpush3.bf16.msra.mxu1 %v1784_v50 }
 0x10c   : > { %1635 = vrot.lane.b32.xlu0 %v1544_v15, %s2189_s30  ;;  %v1556_v58 = vpack.c.bf16 %v1551_v3, %v3296_v57  ;;  %v1586_v35 = vpop.permute.xlu0 %1585 }
 0x10d   : > { %1639 = vrot.lane.b32.xlu1 %v1546_v7, %s2189_s30 }
 0x10f   : > { %v1592_v37 = vpop.permute.xlu1 %1591 }
 0x110   : > { %1645 = vrot.lane.b32.xlu0 %v1553_v0, %s2190_s6 }
 0x111   : > { %1649 = vrot.lane.b32.xlu1 %v1555_v56, %s2190_s6 }
 0x113   : > { %v1602_v38 = vpop.permute.xlu1 %1601 }
 0x114   : > { %1647 = vrot.lane.b32.xlu0 %v1554_v11, %s2190_s6  ;;  %v1588_v27 = vpop.permute.xlu0 %1587 }
 0x115   : > { %1651 = vrot.lane.b32.xlu1 %v1556_v58, %s2190_s6 }
 0x118   : > { %v1598_v19 = vpop.permute.xlu0 %1597 }
 0x11f   : > { %v1600_v18 = vpop.permute.xlu0 %1599 }
 0x123   : > { %v1604_v39 = vpop.permute.xlu1 %1603 }
 0x135   : > { %v1578_v26 = vpop.permute.xlu1 %1577 }
 0x136   : > { %v1672_v44 = vsel %vm1666_vm4, %v1662_v12, %v1578_v26 }
 0x137   : > { %v1681_v42 = vsel %vm1675_vm5, %v1672_v44, %v1590_v13 }
 0x138   : > { %v1690_v8 = vsel %vm1684_vm6, %v1681_v42, %v1602_v38 }
 0x148   : > { %v1574_v59 = vpop.permute.xlu0 %1573 }
 0x149   : > { %v1668_v17 = vsel %vm1666_vm4, %v1656_v5, %v1574_v59 }
 0x14a   : > { %v1677_v55 = vsel %vm1675_vm5, %v1668_v17, %v1586_v35  ;;  %v2049_v35 = vld [vmem:[%s3506_s2] ss:$0 sm:$0xff] }
 0x14b   : > { %v1686_v24 = vsel %vm1684_vm6, %v1677_v55, %v1598_v19 }
 0x154   : > { %v1580_v14 = vpop.permute.xlu1 %1579 }
 0x155   : > { %v1674_v22 = vsel %vm1666_vm4, %v1665_v21, %v1580_v14 }
 0x156   : > { %v1683_v31 = vsel %vm1675_vm5, %v1674_v22, %v1592_v37 }
 0x157   : > { %v1692_v10 = vsel %vm1684_vm6, %v1683_v31, %v1604_v39 }
 0x15f   : > { %v1576_v0 = vpop.permute.xlu0 %1575 }
 0x160   : > { %v1670_v25 = vsel %vm1666_vm4, %v1659_v45, %v1576_v0 }
 0x161   : > { %v1679_v36 = vsel %vm1675_vm5, %v1670_v25, %v1588_v27 }
 0x162   : > { %v1614_v23 = vpop.permute.xlu1 %1613  ;;  %v1688_v51 = vsel %vm1684_vm6, %v1679_v36, %v1600_v18 }
 0x163   : > { %v1699_v28 = vsel %vm1693_vm7, %v1690_v8, %v1614_v23 }
 0x165   : > { %v1610_v57 = vpop.permute.xlu0 %1609 }
 0x166   : > { %v1695_v46 = vsel %vm1693_vm7, %v1686_v24, %v1610_v57 }
 0x16d   : > { %v1616_v11 = vpop.permute.xlu1 %1615 }
 0x16e   : > { %v1612_v53 = vpop.permute.xlu0 %1611  ;;  %v1701_v30 = vsel %vm1693_vm7, %v1692_v10, %v1616_v11 }
 0x16f   : > { %v1697_v54 = vsel %vm1693_vm7, %v1688_v51, %v1612_v53 }
 0x171   : > { %v1626_v52 = vpop.permute.xlu1 %1625 }
 0x172   : > { %v1622_v33 = vpop.permute.xlu0 %1621  ;;  %v1708_v48 = vsel %vm1702_vm8, %v1699_v28, %v1626_v52 }
 0x173   : > { %v1704_v6 = vsel %vm1702_vm8, %v1695_v46, %v1622_v33 }
 0x176   : > { %v1624_v41 = vpop.permute.xlu0 %1623 }
 0x177   : > { %v1628_v61 = vpop.permute.xlu1 %1627  ;;  %v1706_v7 = vsel %vm1702_vm8, %v1697_v54, %v1624_v41 }
 0x178   : > { %v1710_v2 = vsel %vm1702_vm8, %v1701_v30, %v1628_v61 }
 0x17a   : > { %v1634_v62 = vpop.permute.xlu0 %1633 }
 0x17b   : > { %v1638_v40 = vpop.permute.xlu1 %1637  ;;  %v1713_v47 = vsel %vm1711_vm9, %v1704_v6, %v1634_v62 }
 0x17c   : > { %v1717_v20 = vsel %vm1711_vm9, %v1708_v48, %v1638_v40 }
 0x17e   : > { %v1636_v60 = vpop.permute.xlu0 %1635 }
 0x17f   : > { %v1640_v9 = vpop.permute.xlu1 %1639  ;;  %v1715_v32 = vsel %vm1711_vm9, %v1706_v7, %v1636_v60 }
 0x180   : > { %v1719_v50 = vsel %vm1711_vm9, %v1710_v2, %v1640_v9 }
 0x182   : > { %v1646_v16 = vpop.permute.xlu0 %1645 }
 0x183   : > { %v1650_v29 = vpop.permute.xlu1 %1649  ;;  %v1722_v15 = vsel %vm1720_vm10, %v1713_v47, %v1646_v16 }
 0x184   : > { %v1728_v49 = vsel %vm1720_vm10, %v1717_v20, %v1650_v29  ;;  %1734 = vst.msk [vmem:[#allocation2] sm:$0xff] %vm1733_vm11, %v1722_v15 }
 0x185   : > { %1736 = vst.msk [vmem:[#allocation2 + $0x10] sm:$0xff] %vm1733_vm11, %v1728_v49 }
 0x186   : > { %v1648_v56 = vpop.permute.xlu0 %1647 }
 0x187   : > { %v1652_v3 = vpop.permute.xlu1 %1651  ;;  %v1725_v58 = vsel %vm1720_vm10, %v1715_v32, %v1648_v56 }
 0x188   : > { %v1731_v34 = vsel %vm1720_vm10, %v1719_v50, %v1652_v3  ;;  %1735 = vst.msk [vmem:[#allocation2 + $0x8] sm:$0xff] %vm1733_vm11, %v1725_v58 }
 0x189   : > { %1737 = vst.msk [vmem:[#allocation2 + $0x18] sm:$0xff] %vm1733_vm11, %v1731_v34 }
 0x18b   : > { %v1738_v4 = vld [vmem:[#allocation2] sm:$0xff] }
 0x18c   : > { %2073 = vmatprep.mubr.msk.bf16.mxu0 %vm1733_vm11, %v1738_v4  ;;  %v1740_v63 = vld [vmem:[#allocation2 + $0x10] sm:$0xff] }
 0x18d   : > { %2077 = vmatprep.mubr.msk.bf16.mxu1 %vm1733_vm11, %v1740_v63 }
 0x18f   : > { %v1739_v1 = vld [vmem:[#allocation2 + $0x8] sm:$0xff] }
 0x190   : > { %2074 = vmatmul.mubr.msk.bf16.vlgmr.msra.gmra.mrb[0].mxu0 %vm1733_vm11, %v1739_v1  ;;  %v1741_v13 = vld [vmem:[#allocation2 + $0x18] sm:$0xff] }
 0x191   : > { %2078 = vmatmul.mubr.msk.bf16.vlgmr.msra.gmra.mrb[0].mxu1 %vm1733_vm11, %v1741_v13 }
 0x263   : > { %v2075_v37 = vpop.f32.mrb[0].mxu0 }
 0x264   : > { %v1829_v27 = vadd.f32 %v2075_v37, %v2049_v35  ;;  %v2079_v38 = vpop.f32.mrb[0].mxu1  ;;  %v1820_v19 = vpop.f32.mrb[1].mxu0 }
 0x265   : > { %v1845_v39 = vadd.f32 %v2079_v38, %v2049_v35  ;;  %v1821_v18 = vadd.f32 %v2049_v35, %v1820_v19  ;;  %v1836_v26 = vpop.f32.mrb[1].mxu1  ;;  %v2076_v59 = vpop.f32.mrb[2].mxu0 }
 0x266   : > { %1853 = vst [vmem:[%s253_s16 + $0x10] sm:$0xff] %v1829_v27  ;;  %v1837_v14 = vadd.f32 %v2049_v35, %v1836_v26  ;;  %v1832_v0 = vadd.f32 %v2076_v59, %v2049_v35  ;;  %v2080_v23 = vpop.f32.mrb[2].mxu1  ;;  %v1823_v57 = vpop.f32.mrb[3].mxu0 }
 0x267   : > { %1857 = vst [vmem:[%s253_s16 + $0x30] sm:$0xff] %v1845_v39  ;;  %1851 = vst [vmem:[%s253_s16] sm:$0xff] %v1821_v18  ;;  %v1848_v11 = vadd.f32 %v2080_v23, %v2049_v35  ;;  %v1824_v53 = vadd.f32 %v2049_v35, %v1823_v57  ;;  %v1839_v52 = vpop.f32.mrb[3].mxu1 }
 0x268   : > { %1855 = vst [vmem:[%s253_s16 + $0x20] sm:$0xff] %v1837_v14  ;;  %1854 = vst [vmem:[%s253_s16 + $0x18] sm:$0xff] %v1832_v0  ;;  %v1840_v33 = vadd.f32 %v2049_v35, %v1839_v52 }
 0x269   : > { %1858 = vst [vmem:[%s253_s16 + $0x38] sm:$0xff] %v1848_v11  ;;  %1852 = vst [vmem:[%s253_s16 + $0x8] sm:$0xff] %v1824_v53 }
 0x26a   : > { %1856 = vst [vmem:[%s253_s16 + $0x28] sm:$0xff] %v1840_v33 }
 0x26b PF: > { %s13_s14 = sadd.s32 1, %s2181_s14   ;;  %s3842_s12 = smov %s2177_s13 }
 0x26c   : > { %p10_p5 = scmp.ge.s32.totalorder %s13_s14, 4   ;;  %s3843_s13 = smov %s3845_s15 }
 0x26e   :  { %12 = sbr.rel (!%p10_p5) target bundleno = 2 (0x2), region = 75 }

</bundles_post_ra>
